<compile_context>
chip_gen: v7x
topology: tpu7x:2x2x1
jax: 0.10.0
libtpu: 0.0.40
codegen_flags: <defaults>
</compile_context>

<pallas_src>
import functools
import math

import jax
import jax.numpy as jnp
from jax.experimental import pallas as pl
from jax.experimental.pallas import tpu as pltpu

# ----------------------------- model hyperparams -----------------------------
D_MODEL = 32
HEAD = 4
D_K = D_MODEL // HEAD
FWD_EXP = 4
HIDDEN = D_MODEL * FWD_EXP
LN_EPS = 1e-5


# ============================ in-kernel helper math ===========================
def _layer_norm(z, g, b):
    """LayerNorm over the last dim. z: [S, D], g/b: [1, D]."""
    mean = jnp.mean(z, axis=-1, keepdims=True)
    var = jnp.mean(jnp.square(z - mean), axis=-1, keepdims=True)
    return (z - mean) * jax.lax.rsqrt(var + LN_EPS) * g + b


def _mha_block(xq, xk, xv, bias, wq, bq, wk, bk, wv, bv, wfc, bfc, *, head, d_k):
    """Multi-head attention for one batch element, VMEM-resident values only.

    bias is an additive mask bias [Sq, Skv] (0 where kept, -1e9 where masked).
    Instead of concatenating head outputs along the lane axis and then applying
    the fc projection, each head's [Sq, d_k] result is multiplied by the matching
    sublane-aligned d_k-row slice of W_fc and accumulated into [Sq, D].
    """
    scale = 1.0 / math.sqrt(d_k)
    q = jnp.dot(xq, wq, preferred_element_type=jnp.float32) + bq
    k = jnp.dot(xk, wk, preferred_element_type=jnp.float32) + bk
    v = jnp.dot(xv, wv, preferred_element_type=jnp.float32) + bv

    acc = jnp.zeros((xq.shape[0], wfc.shape[1]), jnp.float32)
    for h in range(head):  # static unroll over heads
        sl = slice(h * d_k, (h + 1) * d_k)
        qh, kh, vh = q[:, sl], k[:, sl], v[:, sl]
        s = jnp.dot(qh, kh.T, preferred_element_type=jnp.float32) * scale + bias
        m = jnp.max(s, axis=-1, keepdims=True)
        p = jnp.exp(s - m)
        inv = pl.reciprocal(jnp.sum(p, axis=-1, keepdims=True), approx=True)
        head_out = jnp.dot(p, vh, preferred_element_type=jnp.float32) * inv
        acc = acc + jnp.dot(head_out, wfc[sl, :], preferred_element_type=jnp.float32)
    return acc + bfc


# =============================== fused kernel =================================
def decoder_block_kernel(
    x_ref, k_ref, v_ref, src_mask_ref, trg_mask_ref,
    # self-attention params
    s_wq, s_bq, s_wk, s_bk, s_wv, s_bv, s_wfc, s_bfc,
    # cross-attention params
    c_wq, c_bq, c_wk, c_bk, c_wv, c_bv, c_wfc, c_bfc,
    # layer norms
    n_g, n_b, l1_g, l1_b, l2_g, l2_b,
    # feed forward
    f_w1, f_b1, f_w2, f_b2,
    out_ref, *, head, d_k):
    x = x_ref[0]          # [S, D]
    k_in = k_ref[0]       # [Skv, D]
    v_in = v_ref[0]       # [Skv, D]

    # Hoist masks to additive biases once per batch element.
    trg_bias = jnp.where(trg_mask_ref[0] == 0.0, -1e9, 0.0).astype(jnp.float32)
    src_bias = jnp.where(src_mask_ref[0] == 0.0, -1e9, 0.0).astype(jnp.float32)

    # --- self attention + add & norm:  query = LN(attn(x, x, x, trg) + x) ---
    att1 = _mha_block(x, x, x, trg_bias,
                      s_wq[...], s_bq[...], s_wk[...], s_bk[...],
                      s_wv[...], s_bv[...], s_wfc[...], s_bfc[...],
                      head=head, d_k=d_k)
    query = _layer_norm(att1 + x, n_g[...], n_b[...])

    # --- cross attention + add & norm ---
    att2 = _mha_block(query, k_in, v_in, src_bias,
                      c_wq[...], c_bq[...], c_wk[...], c_bk[...],
                      c_wv[...], c_bv[...], c_wfc[...], c_bfc[...],
                      head=head, d_k=d_k)
    regular = _layer_norm(att2 + query, l1_g[...], l1_b[...])

    # --- feed forward (Linear -> ReLU -> Linear) + add & norm ---
    hid = jnp.maximum(
        jnp.dot(regular, f_w1[...], preferred_element_type=jnp.float32) + f_b1[...],
        0.0)
    ff = jnp.dot(hid, f_w2[...], preferred_element_type=jnp.float32) + f_b2[...]
    out_ref[0] = _layer_norm(ff + regular, l2_g[...], l2_b[...])


# ============================== pallas_call wrapper ===========================
def _batch_spec(s, d):
    return pl.BlockSpec((1, s, d), lambda b: (b, 0, 0))


def _replicated_spec(shape):
    ndim = len(shape)
    return pl.BlockSpec(shape, lambda b: (0,) * ndim)


def decoder_block_forward(params, x, k, v, src_mask, trg_mask):
    B, S, D = x.shape
    Skv = k.shape[1]
    flat = (
        *params["self_attn"], *params["cross_attn"],
        params["norm_g"], params["norm_b"],
        params["ln1_g"], params["ln1_b"],
        params["ln2_g"], params["ln2_b"],
        params["ff_w1"], params["ff_b1"], params["ff_w2"], params["ff_b2"],
    )
    kern = functools.partial(decoder_block_kernel, head=HEAD, d_k=D // HEAD)
    in_specs = [
        _batch_spec(S, D), _batch_spec(Skv, D), _batch_spec(Skv, D),
        pl.BlockSpec((1, S, Skv), lambda b: (b, 0, 0)),   # src_mask
        pl.BlockSpec((1, S, S), lambda b: (b, 0, 0)),     # trg_mask
    ] + [_replicated_spec(p.shape) for p in flat]

    return pl.pallas_call(
        kern,
        out_shape=jax.ShapeDtypeStruct((B, S, D), jnp.float32),
        grid=(B,),
        in_specs=in_specs,
        out_specs=_batch_spec(S, D),
        compiler_params=pltpu.CompilerParams(
            dimension_semantics=("parallel",)),
    )(x, k, v, src_mask, trg_mask, *flat)


# ============================== pure-JAX reference ===========================
def mha_ref(xq, xk, xv, mask, params):
    wq, bq, wk, bk, wv, bv, wfc, bfc = params
    B, Sq, D = xq.shape
    Skv = xk.shape[1]
    q = (xq @ wq + bq).reshape(B, Sq, HEAD, D_K).transpose(0, 2, 1, 3)
    k = (xk @ wk + bk).reshape(B, Skv, HEAD, D_K).transpose(0, 2, 1, 3)
    v = (xv @ wv + bv).reshape(B, Skv, HEAD, D_K).transpose(0, 2, 1, 3)
    scores = jnp.einsum("bhqd,bhkd->bhqk", q, k) / math.sqrt(D_K)
    scores = jnp.where(mask[:, None, :, :] == 0, -1e9, scores)
    scores = jax.nn.softmax(scores, axis=-1)
    out = jnp.einsum("bhqk,bhkd->bhqd", scores, v)
    out = out.transpose(0, 2, 1, 3).reshape(B, Sq, D)
    return out @ wfc + bfc


def ln_ref(z, g, b):
    mean = jnp.mean(z, axis=-1, keepdims=True)
    var = jnp.mean((z - mean) ** 2, axis=-1, keepdims=True)
    return (z - mean) / jnp.sqrt(var + LN_EPS) * g + b


def decoder_block_ref(params, x, k, v, src_mask, trg_mask):
    att1 = mha_ref(x, x, x, trg_mask, params["self_attn"])
    query = ln_ref(att1 + x, params["norm_g"], params["norm_b"])
    att2 = mha_ref(query, k, v, src_mask, params["cross_attn"])
    regular = ln_ref(att2 + query, params["ln1_g"], params["ln1_b"])
    ff = (jnp.maximum(regular @ params["ff_w1"] + params["ff_b1"], 0.0)
          @ params["ff_w2"] + params["ff_b2"])
    return ln_ref(ff + regular, params["ln2_g"], params["ln2_b"])


# ============================== parameter init ===============================
def init_params(key):
    def linear(k, fan_in, fan_out):
        k1, k2 = jax.random.split(k)
        lim = 1.0 / math.sqrt(fan_in)
        w = jax.random.uniform(k1, (fan_in, fan_out), jnp.float32, -lim, lim)
        b = jax.random.uniform(k2, (1, fan_out), jnp.float32, -lim, lim)
        return w, b

    keys = jax.random.split(key, 12)

    def attn_params(ks):
        wq, bq = linear(ks[0], D_MODEL, D_MODEL)
        wk, bk = linear(ks[1], D_MODEL, D_MODEL)
        wv, bv = linear(ks[2], D_MODEL, D_MODEL)
        wfc, bfc = linear(ks[3], D_MODEL, D_MODEL)
        return (wq, bq, wk, bk, wv, bv, wfc, bfc)

    ff_w1, ff_b1 = linear(keys[8], D_MODEL, HIDDEN)
    ff_w2, ff_b2 = linear(keys[9], HIDDEN, D_MODEL)

    ones = jnp.ones((1, D_MODEL), jnp.float32)
    zeros = jnp.zeros((1, D_MODEL), jnp.float32)
    return {
        "self_attn": attn_params(keys[0:4]),
        "cross_attn": attn_params(keys[4:8]),
        "norm_g": ones, "norm_b": zeros,
        "ln1_g": ones, "ln1_b": zeros,
        "ln2_g": ones, "ln2_b": zeros,
        "ff_w1": ff_w1, "ff_b1": ff_b1,
        "ff_w2": ff_w2, "ff_b2": ff_b2,
    }


# ==================================== main ===================================
if __name__ == "__main__":
    B, S, SKV = 2, 8, 8

    key = jax.random.PRNGKey(0)
    kp, kx, kk, kv = jax.random.split(key, 4)
    params = init_params(kp)

    x = jax.random.normal(kx, (B, S, D_MODEL), jnp.float32)
    k_in = jax.random.normal(kk, (B, SKV, D_MODEL), jnp.float32)
    v_in = jax.random.normal(kv, (B, SKV, D_MODEL), jnp.float32)

    # trg_mask: causal mask for self-attention; src_mask: all-ones (no padding)
    trg_mask = jnp.tril(jnp.ones((S, S), jnp.float32))[None, :, :].repeat(B, axis=0)
    src_mask = jnp.ones((B, S, SKV), jnp.float32)

    out = jax.jit(decoder_block_forward)(params, x, k_in, v_in, src_mask, trg_mask)
    out = jax.block_until_ready(out)

    ref = decoder_block_ref(params, x, k_in, v_in, src_mask, trg_mask)
    assert out.shape == (B, S, D_MODEL)
    # Tolerance accounts for the EUP approximate reciprocal in the softmax.
    assert jnp.allclose(out, ref, atol=5e-3, rtol=5e-3), "mismatch vs pure-JAX reference"

    print("KERNEL_OK")
</pallas_src>

<mosaic_0001>
module attributes {stable_mosaic.version = 11 : i64} {
  func.func @decoder_block_kernel(%arg0: i32, %arg1: memref<1x8x32xf32, #tpu.memory_space<vmem>>, %arg2: memref<1x8x32xf32, #tpu.memory_space<vmem>>, %arg3: memref<1x8x32xf32, #tpu.memory_space<vmem>>, %arg4: memref<1x8x8xf32, #tpu.memory_space<vmem>>, %arg5: memref<1x8x8xf32, #tpu.memory_space<vmem>>, %arg6: memref<32x32xf32, #tpu.memory_space<vmem>>, %arg7: memref<1x32xf32, #tpu.memory_space<vmem>>, %arg8: memref<32x32xf32, #tpu.memory_space<vmem>>, %arg9: memref<1x32xf32, #tpu.memory_space<vmem>>, %arg10: memref<32x32xf32, #tpu.memory_space<vmem>>, %arg11: memref<1x32xf32, #tpu.memory_space<vmem>>, %arg12: memref<32x32xf32, #tpu.memory_space<vmem>>, %arg13: memref<1x32xf32, #tpu.memory_space<vmem>>, %arg14: memref<32x32xf32, #tpu.memory_space<vmem>>, %arg15: memref<1x32xf32, #tpu.memory_space<vmem>>, %arg16: memref<32x32xf32, #tpu.memory_space<vmem>>, %arg17: memref<1x32xf32, #tpu.memory_space<vmem>>, %arg18: memref<32x32xf32, #tpu.memory_space<vmem>>, %arg19: memref<1x32xf32, #tpu.memory_space<vmem>>, %arg20: memref<32x32xf32, #tpu.memory_space<vmem>>, %arg21: memref<1x32xf32, #tpu.memory_space<vmem>>, %arg22: memref<1x32xf32, #tpu.memory_space<vmem>>, %arg23: memref<1x32xf32, #tpu.memory_space<vmem>>, %arg24: memref<1x32xf32, #tpu.memory_space<vmem>>, %arg25: memref<1x32xf32, #tpu.memory_space<vmem>>, %arg26: memref<1x32xf32, #tpu.memory_space<vmem>>, %arg27: memref<1x32xf32, #tpu.memory_space<vmem>>, %arg28: memref<32x128xf32, #tpu.memory_space<vmem>>, %arg29: memref<1x128xf32, #tpu.memory_space<vmem>>, %arg30: memref<128x32xf32, #tpu.memory_space<vmem>>, %arg31: memref<1x32xf32, #tpu.memory_space<vmem>>, %arg32: memref<1x8x32xf32, #tpu.memory_space<vmem>>) attributes {dimension_semantics = [#tpu.dimension_semantics<parallel>], iteration_bounds = array<i64: 2>, scalar_prefetch = 0 : i64, scratch_operands = 0 : i64, tpu.core_type = #tpu.core_type<tc>, window_params = [{transform_indices = @transform_0, window_bounds = array<i64: 1, 8, 32>}, {transform_indices = @transform_1, window_bounds = array<i64: 1, 8, 32>}, {transform_indices = @transform_2, window_bounds = array<i64: 1, 8, 32>}, {transform_indices = @transform_3, window_bounds = array<i64: 1, 8, 8>}, {transform_indices = @transform_4, window_bounds = array<i64: 1, 8, 8>}, {pipeline_mode = #tpu.pipeline_mode<synchronous>, transform_indices = @transform_5, window_bounds = array<i64: 32, 32>}, {pipeline_mode = #tpu.pipeline_mode<synchronous>, transform_indices = @transform_6, window_bounds = array<i64: 1, 32>}, {pipeline_mode = #tpu.pipeline_mode<synchronous>, transform_indices = @transform_7, window_bounds = array<i64: 32, 32>}, {pipeline_mode = #tpu.pipeline_mode<synchronous>, transform_indices = @transform_8, window_bounds = array<i64: 1, 32>}, {pipeline_mode = #tpu.pipeline_mode<synchronous>, transform_indices = @transform_9, window_bounds = array<i64: 32, 32>}, {pipeline_mode = #tpu.pipeline_mode<synchronous>, transform_indices = @transform_10, window_bounds = array<i64: 1, 32>}, {pipeline_mode = #tpu.pipeline_mode<synchronous>, transform_indices = @transform_11, window_bounds = array<i64: 32, 32>}, {pipeline_mode = #tpu.pipeline_mode<synchronous>, transform_indices = @transform_12, window_bounds = array<i64: 1, 32>}, {pipeline_mode = #tpu.pipeline_mode<synchronous>, transform_indices = @transform_13, window_bounds = array<i64: 32, 32>}, {pipeline_mode = #tpu.pipeline_mode<synchronous>, transform_indices = @transform_14, window_bounds = array<i64: 1, 32>}, {pipeline_mode = #tpu.pipeline_mode<synchronous>, transform_indices = @transform_15, window_bounds = array<i64: 32, 32>}, {pipeline_mode = #tpu.pipeline_mode<synchronous>, transform_indices = @transform_16, window_bounds = array<i64: 1, 32>}, {pipeline_mode = #tpu.pipeline_mode<synchronous>, transform_indices = @transform_17, window_bounds = array<i64: 32, 32>}, {pipeline_mode = #tpu.pipeline_mode<synchronous>, transform_indices = @transform_18, window_bounds = array<i64: 1, 32>}, {pipeline_mode = #tpu.pipeline_mode<synchronous>, transform_indices = @transform_19, window_bounds = array<i64: 32, 32>}, {pipeline_mode = #tpu.pipeline_mode<synchronous>, transform_indices = @transform_20, window_bounds = array<i64: 1, 32>}, {pipeline_mode = #tpu.pipeline_mode<synchronous>, transform_indices = @transform_21, window_bounds = array<i64: 1, 32>}, {pipeline_mode = #tpu.pipeline_mode<synchronous>, transform_indices = @transform_22, window_bounds = array<i64: 1, 32>}, {pipeline_mode = #tpu.pipeline_mode<synchronous>, transform_indices = @transform_23, window_bounds = array<i64: 1, 32>}, {pipeline_mode = #tpu.pipeline_mode<synchronous>, transform_indices = @transform_24, window_bounds = array<i64: 1, 32>}, {pipeline_mode = #tpu.pipeline_mode<synchronous>, transform_indices = @transform_25, window_bounds = array<i64: 1, 32>}, {pipeline_mode = #tpu.pipeline_mode<synchronous>, transform_indices = @transform_26, window_bounds = array<i64: 1, 32>}, {pipeline_mode = #tpu.pipeline_mode<synchronous>, transform_indices = @transform_27, window_bounds = array<i64: 32, 128>}, {pipeline_mode = #tpu.pipeline_mode<synchronous>, transform_indices = @transform_28, window_bounds = array<i64: 1, 128>}, {pipeline_mode = #tpu.pipeline_mode<synchronous>, transform_indices = @transform_29, window_bounds = array<i64: 128, 32>}, {pipeline_mode = #tpu.pipeline_mode<synchronous>, transform_indices = @transform_30, window_bounds = array<i64: 1, 32>}, {transform_indices = @transform_31, window_bounds = array<i64: 1, 8, 32>}]} {
    %c0 = arith.constant 0 : index
    %c0_0 = arith.constant 0 : index
    %c0_1 = arith.constant 0 : index
    %0 = vector.load %arg1[%c0, %c0_0, %c0_1] : memref<1x8x32xf32, #tpu.memory_space<vmem>>, vector<1x8x32xf32>
    %1 = vector.shape_cast %0 : vector<1x8x32xf32> to vector<8x32xf32>
    %c0_2 = arith.constant 0 : index
    %c0_3 = arith.constant 0 : index
    %c0_4 = arith.constant 0 : index
    %2 = vector.load %arg2[%c0_2, %c0_3, %c0_4] : memref<1x8x32xf32, #tpu.memory_space<vmem>>, vector<1x8x32xf32>
    %3 = vector.shape_cast %2 : vector<1x8x32xf32> to vector<8x32xf32>
    %c0_5 = arith.constant 0 : index
    %c0_6 = arith.constant 0 : index
    %c0_7 = arith.constant 0 : index
    %4 = vector.load %arg3[%c0_5, %c0_6, %c0_7] : memref<1x8x32xf32, #tpu.memory_space<vmem>>, vector<1x8x32xf32>
    %5 = vector.shape_cast %4 : vector<1x8x32xf32> to vector<8x32xf32>
    %c0_8 = arith.constant 0 : index
    %c0_9 = arith.constant 0 : index
    %c0_10 = arith.constant 0 : index
    %6 = vector.load %arg5[%c0_8, %c0_9, %c0_10] : memref<1x8x8xf32, #tpu.memory_space<vmem>>, vector<1x8x8xf32>
    %7 = vector.shape_cast %6 : vector<1x8x8xf32> to vector<8x8xf32>
    %cst = arith.constant 0.000000e+00 : f32
    %8 = vector.broadcast %cst : f32 to vector<8x8xf32>
    %9 = arith.cmpf oeq, %7, %8 : vector<8x8xf32>
    %cst_11 = arith.constant -1.000000e+09 : f32
    %cst_12 = arith.constant 0.000000e+00 : f32
    %10 = vector.broadcast %cst_11 : f32 to vector<8x8xf32>
    %11 = vector.broadcast %cst_12 : f32 to vector<8x8xf32>
    %12 = arith.select %9, %10, %11 : vector<8x8xi1>, vector<8x8xf32>
    %c0_13 = arith.constant 0 : index
    %c0_14 = arith.constant 0 : index
    %c0_15 = arith.constant 0 : index
    %13 = vector.load %arg4[%c0_13, %c0_14, %c0_15] : memref<1x8x8xf32, #tpu.memory_space<vmem>>, vector<1x8x8xf32>
    %14 = vector.shape_cast %13 : vector<1x8x8xf32> to vector<8x8xf32>
    %cst_16 = arith.constant 0.000000e+00 : f32
    %15 = vector.broadcast %cst_16 : f32 to vector<8x8xf32>
    %16 = arith.cmpf oeq, %14, %15 : vector<8x8xf32>
    %cst_17 = arith.constant -1.000000e+09 : f32
    %cst_18 = arith.constant 0.000000e+00 : f32
    %17 = vector.broadcast %cst_17 : f32 to vector<8x8xf32>
    %18 = vector.broadcast %cst_18 : f32 to vector<8x8xf32>
    %19 = arith.select %16, %17, %18 : vector<8x8xi1>, vector<8x8xf32>
    %c0_19 = arith.constant 0 : index
    %c0_20 = arith.constant 0 : index
    %20 = vector.load %arg6[%c0_19, %c0_20] : memref<32x32xf32, #tpu.memory_space<vmem>>, vector<32x32xf32>
    %c0_21 = arith.constant 0 : index
    %c0_22 = arith.constant 0 : index
    %21 = vector.load %arg7[%c0_21, %c0_22] : memref<1x32xf32, #tpu.memory_space<vmem>>, vector<1x32xf32>
    %c0_23 = arith.constant 0 : index
    %c0_24 = arith.constant 0 : index
    %22 = vector.load %arg8[%c0_23, %c0_24] : memref<32x32xf32, #tpu.memory_space<vmem>>, vector<32x32xf32>
    %c0_25 = arith.constant 0 : index
    %c0_26 = arith.constant 0 : index
    %23 = vector.load %arg9[%c0_25, %c0_26] : memref<1x32xf32, #tpu.memory_space<vmem>>, vector<1x32xf32>
    %c0_27 = arith.constant 0 : index
    %c0_28 = arith.constant 0 : index
    %24 = vector.load %arg10[%c0_27, %c0_28] : memref<32x32xf32, #tpu.memory_space<vmem>>, vector<32x32xf32>
    %c0_29 = arith.constant 0 : index
    %c0_30 = arith.constant 0 : index
    %25 = vector.load %arg11[%c0_29, %c0_30] : memref<1x32xf32, #tpu.memory_space<vmem>>, vector<1x32xf32>
    %c0_31 = arith.constant 0 : index
    %c0_32 = arith.constant 0 : index
    %26 = vector.load %arg12[%c0_31, %c0_32] : memref<32x32xf32, #tpu.memory_space<vmem>>, vector<32x32xf32>
    %c0_33 = arith.constant 0 : index
    %c0_34 = arith.constant 0 : index
    %27 = vector.load %arg13[%c0_33, %c0_34] : memref<1x32xf32, #tpu.memory_space<vmem>>, vector<1x32xf32>
    %cst_35 = arith.constant dense<0.000000e+00> : vector<8x32xf32>
    %28 = tpu.matmul %1, %20, %cst_35 {dimension_numbers = #tpu.dot_dimension_numbers<[1], [0], [0], [1], [0, 0, 1, 1], [], []>} : vector<8x32xf32>, vector<32x32xf32>, vector<8x32xf32> -> vector<8x32xf32>
    %29 = vector.broadcast %21 : vector<1x32xf32> to vector<8x32xf32>
    %30 = arith.addf %28, %29 : vector<8x32xf32>
    %cst_36 = arith.constant dense<0.000000e+00> : vector<8x32xf32>
    %31 = tpu.matmul %1, %22, %cst_36 {dimension_numbers = #tpu.dot_dimension_numbers<[1], [0], [0], [1], [0, 0, 1, 1], [], []>} : vector<8x32xf32>, vector<32x32xf32>, vector<8x32xf32> -> vector<8x32xf32>
    %32 = vector.broadcast %23 : vector<1x32xf32> to vector<8x32xf32>
    %33 = arith.addf %31, %32 : vector<8x32xf32>
    %cst_37 = arith.constant dense<0.000000e+00> : vector<8x32xf32>
    %34 = tpu.matmul %1, %24, %cst_37 {dimension_numbers = #tpu.dot_dimension_numbers<[1], [0], [0], [1], [0, 0, 1, 1], [], []>} : vector<8x32xf32>, vector<32x32xf32>, vector<8x32xf32> -> vector<8x32xf32>
    %35 = vector.broadcast %25 : vector<1x32xf32> to vector<8x32xf32>
    %36 = arith.addf %34, %35 : vector<8x32xf32>
    %cst_38 = arith.constant 0.000000e+00 : f32
    %37 = vector.broadcast %cst_38 : f32 to vector<8x32xf32>
    %38 = vector.extract_strided_slice %30 {offsets = [0, 0], sizes = [8, 8], strides = [1, 1]} : vector<8x32xf32> to vector<8x8xf32>
    %39 = vector.extract_strided_slice %33 {offsets = [0, 0], sizes = [8, 8], strides = [1, 1]} : vector<8x32xf32> to vector<8x8xf32>
    %40 = vector.extract_strided_slice %36 {offsets = [0, 0], sizes = [8, 8], strides = [1, 1]} : vector<8x32xf32> to vector<8x8xf32>
    %41 = tpu.transpose %39, [1, 0] : vector<8x8xf32> -> vector<8x8xf32>
    %cst_39 = arith.constant dense<0.000000e+00> : vector<8x8xf32>
    %42 = tpu.matmul %38, %41, %cst_39 {dimension_numbers = #tpu.dot_dimension_numbers<[1], [0], [0], [1], [0, 0, 1, 1], [], []>} : vector<8x8xf32>, vector<8x8xf32>, vector<8x8xf32> -> vector<8x8xf32>
    %cst_40 = arith.constant 0.353553385 : f32
    %43 = vector.broadcast %cst_40 : f32 to vector<8x8xf32>
    %44 = arith.mulf %42, %43 : vector<8x8xf32>
    %45 = arith.addf %44, %12 : vector<8x8xf32>
    %cst_41 = arith.constant dense<0xFF800000> : vector<8xf32>
    %46 = vector.multi_reduction <maximumf>, %45, %cst_41 [1] : vector<8x8xf32> to vector<8xf32>
    %47 = vector.shape_cast %46 : vector<8xf32> to vector<8x1xf32>
    %48 = vector.broadcast %47 : vector<8x1xf32> to vector<8x8xf32>
    %49 = arith.subf %45, %48 : vector<8x8xf32>
    %50 = math.exp %49 : vector<8x8xf32>
    %cst_42 = arith.constant dense<0.000000e+00> : vector<8xf32>
    %51 = vector.multi_reduction <add>, %50, %cst_42 [1] : vector<8x8xf32> to vector<8xf32>
    %52 = vector.shape_cast %51 : vector<8xf32> to vector<8x1xf32>
    %53 = tpu.reciprocal %52 {approx = true} : vector<8x1xf32> -> vector<8x1xf32>
    %cst_43 = arith.constant dense<0.000000e+00> : vector<8x8xf32>
    %54 = tpu.matmul %50, %40, %cst_43 {dimension_numbers = #tpu.dot_dimension_numbers<[1], [0], [0], [1], [0, 0, 1, 1], [], []>} : vector<8x8xf32>, vector<8x8xf32>, vector<8x8xf32> -> vector<8x8xf32>
    %55 = vector.broadcast %53 : vector<8x1xf32> to vector<8x8xf32>
    %56 = arith.mulf %54, %55 : vector<8x8xf32>
    %57 = vector.extract_strided_slice %26 {offsets = [0, 0], sizes = [8, 32], strides = [1, 1]} : vector<32x32xf32> to vector<8x32xf32>
    %cst_44 = arith.constant dense<0.000000e+00> : vector<8x32xf32>
    %58 = tpu.matmul %56, %57, %cst_44 {dimension_numbers = #tpu.dot_dimension_numbers<[1], [0], [0], [1], [0, 0, 1, 1], [], []>} : vector<8x8xf32>, vector<8x32xf32>, vector<8x32xf32> -> vector<8x32xf32>
    %59 = arith.addf %37, %58 : vector<8x32xf32>
    %60 = vector.extract_strided_slice %30 {offsets = [0, 8], sizes = [8, 8], strides = [1, 1]} : vector<8x32xf32> to vector<8x8xf32>
    %61 = vector.extract_strided_slice %33 {offsets = [0, 8], sizes = [8, 8], strides = [1, 1]} : vector<8x32xf32> to vector<8x8xf32>
    %62 = vector.extract_strided_slice %36 {offsets = [0, 8], sizes = [8, 8], strides = [1, 1]} : vector<8x32xf32> to vector<8x8xf32>
    %63 = tpu.transpose %61, [1, 0] : vector<8x8xf32> -> vector<8x8xf32>
    %cst_45 = arith.constant dense<0.000000e+00> : vector<8x8xf32>
    %64 = tpu.matmul %60, %63, %cst_45 {dimension_numbers = #tpu.dot_dimension_numbers<[1], [0], [0], [1], [0, 0, 1, 1], [], []>} : vector<8x8xf32>, vector<8x8xf32>, vector<8x8xf32> -> vector<8x8xf32>
    %cst_46 = arith.constant 0.353553385 : f32
    %65 = vector.broadcast %cst_46 : f32 to vector<8x8xf32>
    %66 = arith.mulf %64, %65 : vector<8x8xf32>
    %67 = arith.addf %66, %12 : vector<8x8xf32>
    %cst_47 = arith.constant dense<0xFF800000> : vector<8xf32>
    %68 = vector.multi_reduction <maximumf>, %67, %cst_47 [1] : vector<8x8xf32> to vector<8xf32>
    %69 = vector.shape_cast %68 : vector<8xf32> to vector<8x1xf32>
    %70 = vector.broadcast %69 : vector<8x1xf32> to vector<8x8xf32>
    %71 = arith.subf %67, %70 : vector<8x8xf32>
    %72 = math.exp %71 : vector<8x8xf32>
    %cst_48 = arith.constant dense<0.000000e+00> : vector<8xf32>
    %73 = vector.multi_reduction <add>, %72, %cst_48 [1] : vector<8x8xf32> to vector<8xf32>
    %74 = vector.shape_cast %73 : vector<8xf32> to vector<8x1xf32>
    %75 = tpu.reciprocal %74 {approx = true} : vector<8x1xf32> -> vector<8x1xf32>
    %cst_49 = arith.constant dense<0.000000e+00> : vector<8x8xf32>
    %76 = tpu.matmul %72, %62, %cst_49 {dimension_numbers = #tpu.dot_dimension_numbers<[1], [0], [0], [1], [0, 0, 1, 1], [], []>} : vector<8x8xf32>, vector<8x8xf32>, vector<8x8xf32> -> vector<8x8xf32>
    %77 = vector.broadcast %75 : vector<8x1xf32> to vector<8x8xf32>
    %78 = arith.mulf %76, %77 : vector<8x8xf32>
    %79 = vector.extract_strided_slice %26 {offsets = [8, 0], sizes = [8, 32], strides = [1, 1]} : vector<32x32xf32> to vector<8x32xf32>
    %cst_50 = arith.constant dense<0.000000e+00> : vector<8x32xf32>
    %80 = tpu.matmul %78, %79, %cst_50 {dimension_numbers = #tpu.dot_dimension_numbers<[1], [0], [0], [1], [0, 0, 1, 1], [], []>} : vector<8x8xf32>, vector<8x32xf32>, vector<8x32xf32> -> vector<8x32xf32>
    %81 = arith.addf %59, %80 : vector<8x32xf32>
    %82 = vector.extract_strided_slice %30 {offsets = [0, 16], sizes = [8, 8], strides = [1, 1]} : vector<8x32xf32> to vector<8x8xf32>
    %83 = vector.extract_strided_slice %33 {offsets = [0, 16], sizes = [8, 8], strides = [1, 1]} : vector<8x32xf32> to vector<8x8xf32>
    %84 = vector.extract_strided_slice %36 {offsets = [0, 16], sizes = [8, 8], strides = [1, 1]} : vector<8x32xf32> to vector<8x8xf32>
    %85 = tpu.transpose %83, [1, 0] : vector<8x8xf32> -> vector<8x8xf32>
    %cst_51 = arith.constant dense<0.000000e+00> : vector<8x8xf32>
    %86 = tpu.matmul %82, %85, %cst_51 {dimension_numbers = #tpu.dot_dimension_numbers<[1], [0], [0], [1], [0, 0, 1, 1], [], []>} : vector<8x8xf32>, vector<8x8xf32>, vector<8x8xf32> -> vector<8x8xf32>
    %cst_52 = arith.constant 0.353553385 : f32
    %87 = vector.broadcast %cst_52 : f32 to vector<8x8xf32>
    %88 = arith.mulf %86, %87 : vector<8x8xf32>
    %89 = arith.addf %88, %12 : vector<8x8xf32>
    %cst_53 = arith.constant dense<0xFF800000> : vector<8xf32>
    %90 = vector.multi_reduction <maximumf>, %89, %cst_53 [1] : vector<8x8xf32> to vector<8xf32>
    %91 = vector.shape_cast %90 : vector<8xf32> to vector<8x1xf32>
    %92 = vector.broadcast %91 : vector<8x1xf32> to vector<8x8xf32>
    %93 = arith.subf %89, %92 : vector<8x8xf32>
    %94 = math.exp %93 : vector<8x8xf32>
    %cst_54 = arith.constant dense<0.000000e+00> : vector<8xf32>
    %95 = vector.multi_reduction <add>, %94, %cst_54 [1] : vector<8x8xf32> to vector<8xf32>
    %96 = vector.shape_cast %95 : vector<8xf32> to vector<8x1xf32>
    %97 = tpu.reciprocal %96 {approx = true} : vector<8x1xf32> -> vector<8x1xf32>
    %cst_55 = arith.constant dense<0.000000e+00> : vector<8x8xf32>
    %98 = tpu.matmul %94, %84, %cst_55 {dimension_numbers = #tpu.dot_dimension_numbers<[1], [0], [0], [1], [0, 0, 1, 1], [], []>} : vector<8x8xf32>, vector<8x8xf32>, vector<8x8xf32> -> vector<8x8xf32>
    %99 = vector.broadcast %97 : vector<8x1xf32> to vector<8x8xf32>
    %100 = arith.mulf %98, %99 : vector<8x8xf32>
    %101 = vector.extract_strided_slice %26 {offsets = [16, 0], sizes = [8, 32], strides = [1, 1]} : vector<32x32xf32> to vector<8x32xf32>
    %cst_56 = arith.constant dense<0.000000e+00> : vector<8x32xf32>
    %102 = tpu.matmul %100, %101, %cst_56 {dimension_numbers = #tpu.dot_dimension_numbers<[1], [0], [0], [1], [0, 0, 1, 1], [], []>} : vector<8x8xf32>, vector<8x32xf32>, vector<8x32xf32> -> vector<8x32xf32>
    %103 = arith.addf %81, %102 : vector<8x32xf32>
    %104 = vector.extract_strided_slice %30 {offsets = [0, 24], sizes = [8, 8], strides = [1, 1]} : vector<8x32xf32> to vector<8x8xf32>
    %105 = vector.extract_strided_slice %33 {offsets = [0, 24], sizes = [8, 8], strides = [1, 1]} : vector<8x32xf32> to vector<8x8xf32>
    %106 = vector.extract_strided_slice %36 {offsets = [0, 24], sizes = [8, 8], strides = [1, 1]} : vector<8x32xf32> to vector<8x8xf32>
    %107 = tpu.transpose %105, [1, 0] : vector<8x8xf32> -> vector<8x8xf32>
    %cst_57 = arith.constant dense<0.000000e+00> : vector<8x8xf32>
    %108 = tpu.matmul %104, %107, %cst_57 {dimension_numbers = #tpu.dot_dimension_numbers<[1], [0], [0], [1], [0, 0, 1, 1], [], []>} : vector<8x8xf32>, vector<8x8xf32>, vector<8x8xf32> -> vector<8x8xf32>
    %cst_58 = arith.constant 0.353553385 : f32
    %109 = vector.broadcast %cst_58 : f32 to vector<8x8xf32>
    %110 = arith.mulf %108, %109 : vector<8x8xf32>
    %111 = arith.addf %110, %12 : vector<8x8xf32>
    %cst_59 = arith.constant dense<0xFF800000> : vector<8xf32>
    %112 = vector.multi_reduction <maximumf>, %111, %cst_59 [1] : vector<8x8xf32> to vector<8xf32>
    %113 = vector.shape_cast %112 : vector<8xf32> to vector<8x1xf32>
    %114 = vector.broadcast %113 : vector<8x1xf32> to vector<8x8xf32>
    %115 = arith.subf %111, %114 : vector<8x8xf32>
    %116 = math.exp %115 : vector<8x8xf32>
    %cst_60 = arith.constant dense<0.000000e+00> : vector<8xf32>
    %117 = vector.multi_reduction <add>, %116, %cst_60 [1] : vector<8x8xf32> to vector<8xf32>
    %118 = vector.shape_cast %117 : vector<8xf32> to vector<8x1xf32>
    %119 = tpu.reciprocal %118 {approx = true} : vector<8x1xf32> -> vector<8x1xf32>
    %cst_61 = arith.constant dense<0.000000e+00> : vector<8x8xf32>
    %120 = tpu.matmul %116, %106, %cst_61 {dimension_numbers = #tpu.dot_dimension_numbers<[1], [0], [0], [1], [0, 0, 1, 1], [], []>} : vector<8x8xf32>, vector<8x8xf32>, vector<8x8xf32> -> vector<8x8xf32>
    %121 = vector.broadcast %119 : vector<8x1xf32> to vector<8x8xf32>
    %122 = arith.mulf %120, %121 : vector<8x8xf32>
    %123 = vector.extract_strided_slice %26 {offsets = [24, 0], sizes = [8, 32], strides = [1, 1]} : vector<32x32xf32> to vector<8x32xf32>
    %cst_62 = arith.constant dense<0.000000e+00> : vector<8x32xf32>
    %124 = tpu.matmul %122, %123, %cst_62 {dimension_numbers = #tpu.dot_dimension_numbers<[1], [0], [0], [1], [0, 0, 1, 1], [], []>} : vector<8x8xf32>, vector<8x32xf32>, vector<8x32xf32> -> vector<8x32xf32>
    %125 = arith.addf %103, %124 : vector<8x32xf32>
    %126 = vector.broadcast %27 : vector<1x32xf32> to vector<8x32xf32>
    %127 = arith.addf %125, %126 : vector<8x32xf32>
    %128 = arith.addf %127, %1 : vector<8x32xf32>
    %c0_63 = arith.constant 0 : index
    %c0_64 = arith.constant 0 : index
    %129 = vector.load %arg22[%c0_63, %c0_64] : memref<1x32xf32, #tpu.memory_space<vmem>>, vector<1x32xf32>
    %c0_65 = arith.constant 0 : index
    %c0_66 = arith.constant 0 : index
    %130 = vector.load %arg23[%c0_65, %c0_66] : memref<1x32xf32, #tpu.memory_space<vmem>>, vector<1x32xf32>
    %cst_67 = arith.constant dense<0.000000e+00> : vector<8xf32>
    %131 = vector.multi_reduction <add>, %128, %cst_67 [1] : vector<8x32xf32> to vector<8xf32>
    %132 = vector.shape_cast %131 : vector<8xf32> to vector<8x1xf32>
    %cst_68 = arith.constant 3.200000e+01 : f32
    %133 = vector.broadcast %cst_68 : f32 to vector<8x1xf32>
    %134 = arith.divf %132, %133 : vector<8x1xf32>
    %135 = vector.broadcast %134 : vector<8x1xf32> to vector<8x32xf32>
    %136 = arith.subf %128, %135 : vector<8x32xf32>
    %137 = arith.mulf %136, %136 : vector<8x32xf32>
    %cst_69 = arith.constant dense<0.000000e+00> : vector<8xf32>
    %138 = vector.multi_reduction <add>, %137, %cst_69 [1] : vector<8x32xf32> to vector<8xf32>
    %139 = vector.shape_cast %138 : vector<8xf32> to vector<8x1xf32>
    %cst_70 = arith.constant 3.200000e+01 : f32
    %140 = vector.broadcast %cst_70 : f32 to vector<8x1xf32>
    %141 = arith.divf %139, %140 : vector<8x1xf32>
    %142 = vector.broadcast %134 : vector<8x1xf32> to vector<8x32xf32>
    %143 = arith.subf %128, %142 : vector<8x32xf32>
    %cst_71 = arith.constant 9.99999974E-6 : f32
    %144 = vector.broadcast %cst_71 : f32 to vector<8x1xf32>
    %145 = arith.addf %141, %144 : vector<8x1xf32>
    %146 = math.rsqrt %145 : vector<8x1xf32>
    %147 = vector.broadcast %146 : vector<8x1xf32> to vector<8x32xf32>
    %148 = arith.mulf %143, %147 : vector<8x32xf32>
    %149 = vector.broadcast %129 : vector<1x32xf32> to vector<8x32xf32>
    %150 = arith.mulf %148, %149 : vector<8x32xf32>
    %151 = vector.broadcast %130 : vector<1x32xf32> to vector<8x32xf32>
    %152 = arith.addf %150, %151 : vector<8x32xf32>
    %c0_72 = arith.constant 0 : index
    %c0_73 = arith.constant 0 : index
    %153 = vector.load %arg14[%c0_72, %c0_73] : memref<32x32xf32, #tpu.memory_space<vmem>>, vector<32x32xf32>
    %c0_74 = arith.constant 0 : index
    %c0_75 = arith.constant 0 : index
    %154 = vector.load %arg15[%c0_74, %c0_75] : memref<1x32xf32, #tpu.memory_space<vmem>>, vector<1x32xf32>
    %c0_76 = arith.constant 0 : index
    %c0_77 = arith.constant 0 : index
    %155 = vector.load %arg16[%c0_76, %c0_77] : memref<32x32xf32, #tpu.memory_space<vmem>>, vector<32x32xf32>
    %c0_78 = arith.constant 0 : index
    %c0_79 = arith.constant 0 : index
    %156 = vector.load %arg17[%c0_78, %c0_79] : memref<1x32xf32, #tpu.memory_space<vmem>>, vector<1x32xf32>
    %c0_80 = arith.constant 0 : index
    %c0_81 = arith.constant 0 : index
    %157 = vector.load %arg18[%c0_80, %c0_81] : memref<32x32xf32, #tpu.memory_space<vmem>>, vector<32x32xf32>
    %c0_82 = arith.constant 0 : index
    %c0_83 = arith.constant 0 : index
    %158 = vector.load %arg19[%c0_82, %c0_83] : memref<1x32xf32, #tpu.memory_space<vmem>>, vector<1x32xf32>
    %c0_84 = arith.constant 0 : index
    %c0_85 = arith.constant 0 : index
    %159 = vector.load %arg20[%c0_84, %c0_85] : memref<32x32xf32, #tpu.memory_space<vmem>>, vector<32x32xf32>
    %c0_86 = arith.constant 0 : index
    %c0_87 = arith.constant 0 : index
    %160 = vector.load %arg21[%c0_86, %c0_87] : memref<1x32xf32, #tpu.memory_space<vmem>>, vector<1x32xf32>
    %cst_88 = arith.constant dense<0.000000e+00> : vector<8x32xf32>
    %161 = tpu.matmul %152, %153, %cst_88 {dimension_numbers = #tpu.dot_dimension_numbers<[1], [0], [0], [1], [0, 0, 1, 1], [], []>} : vector<8x32xf32>, vector<32x32xf32>, vector<8x32xf32> -> vector<8x32xf32>
    %162 = vector.broadcast %154 : vector<1x32xf32> to vector<8x32xf32>
    %163 = arith.addf %161, %162 : vector<8x32xf32>
    %cst_89 = arith.constant dense<0.000000e+00> : vector<8x32xf32>
    %164 = tpu.matmul %3, %155, %cst_89 {dimension_numbers = #tpu.dot_dimension_numbers<[1], [0], [0], [1], [0, 0, 1, 1], [], []>} : vector<8x32xf32>, vector<32x32xf32>, vector<8x32xf32> -> vector<8x32xf32>
    %165 = vector.broadcast %156 : vector<1x32xf32> to vector<8x32xf32>
    %166 = arith.addf %164, %165 : vector<8x32xf32>
    %cst_90 = arith.constant dense<0.000000e+00> : vector<8x32xf32>
    %167 = tpu.matmul %5, %157, %cst_90 {dimension_numbers = #tpu.dot_dimension_numbers<[1], [0], [0], [1], [0, 0, 1, 1], [], []>} : vector<8x32xf32>, vector<32x32xf32>, vector<8x32xf32> -> vector<8x32xf32>
    %168 = vector.broadcast %158 : vector<1x32xf32> to vector<8x32xf32>
    %169 = arith.addf %167, %168 : vector<8x32xf32>
    %cst_91 = arith.constant 0.000000e+00 : f32
    %170 = vector.broadcast %cst_91 : f32 to vector<8x32xf32>
    %171 = vector.extract_strided_slice %163 {offsets = [0, 0], sizes = [8, 8], strides = [1, 1]} : vector<8x32xf32> to vector<8x8xf32>
    %172 = vector.extract_strided_slice %166 {offsets = [0, 0], sizes = [8, 8], strides = [1, 1]} : vector<8x32xf32> to vector<8x8xf32>
    %173 = vector.extract_strided_slice %169 {offsets = [0, 0], sizes = [8, 8], strides = [1, 1]} : vector<8x32xf32> to vector<8x8xf32>
    %174 = tpu.transpose %172, [1, 0] : vector<8x8xf32> -> vector<8x8xf32>
    %cst_92 = arith.constant dense<0.000000e+00> : vector<8x8xf32>
    %175 = tpu.matmul %171, %174, %cst_92 {dimension_numbers = #tpu.dot_dimension_numbers<[1], [0], [0], [1], [0, 0, 1, 1], [], []>} : vector<8x8xf32>, vector<8x8xf32>, vector<8x8xf32> -> vector<8x8xf32>
    %cst_93 = arith.constant 0.353553385 : f32
    %176 = vector.broadcast %cst_93 : f32 to vector<8x8xf32>
    %177 = arith.mulf %175, %176 : vector<8x8xf32>
    %178 = arith.addf %177, %19 : vector<8x8xf32>
    %cst_94 = arith.constant dense<0xFF800000> : vector<8xf32>
    %179 = vector.multi_reduction <maximumf>, %178, %cst_94 [1] : vector<8x8xf32> to vector<8xf32>
    %180 = vector.shape_cast %179 : vector<8xf32> to vector<8x1xf32>
    %181 = vector.broadcast %180 : vector<8x1xf32> to vector<8x8xf32>
    %182 = arith.subf %178, %181 : vector<8x8xf32>
    %183 = math.exp %182 : vector<8x8xf32>
    %cst_95 = arith.constant dense<0.000000e+00> : vector<8xf32>
    %184 = vector.multi_reduction <add>, %183, %cst_95 [1] : vector<8x8xf32> to vector<8xf32>
    %185 = vector.shape_cast %184 : vector<8xf32> to vector<8x1xf32>
    %186 = tpu.reciprocal %185 {approx = true} : vector<8x1xf32> -> vector<8x1xf32>
    %cst_96 = arith.constant dense<0.000000e+00> : vector<8x8xf32>
    %187 = tpu.matmul %183, %173, %cst_96 {dimension_numbers = #tpu.dot_dimension_numbers<[1], [0], [0], [1], [0, 0, 1, 1], [], []>} : vector<8x8xf32>, vector<8x8xf32>, vector<8x8xf32> -> vector<8x8xf32>
    %188 = vector.broadcast %186 : vector<8x1xf32> to vector<8x8xf32>
    %189 = arith.mulf %187, %188 : vector<8x8xf32>
    %190 = vector.extract_strided_slice %159 {offsets = [0, 0], sizes = [8, 32], strides = [1, 1]} : vector<32x32xf32> to vector<8x32xf32>
    %cst_97 = arith.constant dense<0.000000e+00> : vector<8x32xf32>
    %191 = tpu.matmul %189, %190, %cst_97 {dimension_numbers = #tpu.dot_dimension_numbers<[1], [0], [0], [1], [0, 0, 1, 1], [], []>} : vector<8x8xf32>, vector<8x32xf32>, vector<8x32xf32> -> vector<8x32xf32>
    %192 = arith.addf %170, %191 : vector<8x32xf32>
    %193 = vector.extract_strided_slice %163 {offsets = [0, 8], sizes = [8, 8], strides = [1, 1]} : vector<8x32xf32> to vector<8x8xf32>
    %194 = vector.extract_strided_slice %166 {offsets = [0, 8], sizes = [8, 8], strides = [1, 1]} : vector<8x32xf32> to vector<8x8xf32>
    %195 = vector.extract_strided_slice %169 {offsets = [0, 8], sizes = [8, 8], strides = [1, 1]} : vector<8x32xf32> to vector<8x8xf32>
    %196 = tpu.transpose %194, [1, 0] : vector<8x8xf32> -> vector<8x8xf32>
    %cst_98 = arith.constant dense<0.000000e+00> : vector<8x8xf32>
    %197 = tpu.matmul %193, %196, %cst_98 {dimension_numbers = #tpu.dot_dimension_numbers<[1], [0], [0], [1], [0, 0, 1, 1], [], []>} : vector<8x8xf32>, vector<8x8xf32>, vector<8x8xf32> -> vector<8x8xf32>
    %cst_99 = arith.constant 0.353553385 : f32
    %198 = vector.broadcast %cst_99 : f32 to vector<8x8xf32>
    %199 = arith.mulf %197, %198 : vector<8x8xf32>
    %200 = arith.addf %199, %19 : vector<8x8xf32>
    %cst_100 = arith.constant dense<0xFF800000> : vector<8xf32>
    %201 = vector.multi_reduction <maximumf>, %200, %cst_100 [1] : vector<8x8xf32> to vector<8xf32>
    %202 = vector.shape_cast %201 : vector<8xf32> to vector<8x1xf32>
    %203 = vector.broadcast %202 : vector<8x1xf32> to vector<8x8xf32>
    %204 = arith.subf %200, %203 : vector<8x8xf32>
    %205 = math.exp %204 : vector<8x8xf32>
    %cst_101 = arith.constant dense<0.000000e+00> : vector<8xf32>
    %206 = vector.multi_reduction <add>, %205, %cst_101 [1] : vector<8x8xf32> to vector<8xf32>
    %207 = vector.shape_cast %206 : vector<8xf32> to vector<8x1xf32>
    %208 = tpu.reciprocal %207 {approx = true} : vector<8x1xf32> -> vector<8x1xf32>
    %cst_102 = arith.constant dense<0.000000e+00> : vector<8x8xf32>
    %209 = tpu.matmul %205, %195, %cst_102 {dimension_numbers = #tpu.dot_dimension_numbers<[1], [0], [0], [1], [0, 0, 1, 1], [], []>} : vector<8x8xf32>, vector<8x8xf32>, vector<8x8xf32> -> vector<8x8xf32>
    %210 = vector.broadcast %208 : vector<8x1xf32> to vector<8x8xf32>
    %211 = arith.mulf %209, %210 : vector<8x8xf32>
    %212 = vector.extract_strided_slice %159 {offsets = [8, 0], sizes = [8, 32], strides = [1, 1]} : vector<32x32xf32> to vector<8x32xf32>
    %cst_103 = arith.constant dense<0.000000e+00> : vector<8x32xf32>
    %213 = tpu.matmul %211, %212, %cst_103 {dimension_numbers = #tpu.dot_dimension_numbers<[1], [0], [0], [1], [0, 0, 1, 1], [], []>} : vector<8x8xf32>, vector<8x32xf32>, vector<8x32xf32> -> vector<8x32xf32>
    %214 = arith.addf %192, %213 : vector<8x32xf32>
    %215 = vector.extract_strided_slice %163 {offsets = [0, 16], sizes = [8, 8], strides = [1, 1]} : vector<8x32xf32> to vector<8x8xf32>
    %216 = vector.extract_strided_slice %166 {offsets = [0, 16], sizes = [8, 8], strides = [1, 1]} : vector<8x32xf32> to vector<8x8xf32>
    %217 = vector.extract_strided_slice %169 {offsets = [0, 16], sizes = [8, 8], strides = [1, 1]} : vector<8x32xf32> to vector<8x8xf32>
    %218 = tpu.transpose %216, [1, 0] : vector<8x8xf32> -> vector<8x8xf32>
    %cst_104 = arith.constant dense<0.000000e+00> : vector<8x8xf32>
    %219 = tpu.matmul %215, %218, %cst_104 {dimension_numbers = #tpu.dot_dimension_numbers<[1], [0], [0], [1], [0, 0, 1, 1], [], []>} : vector<8x8xf32>, vector<8x8xf32>, vector<8x8xf32> -> vector<8x8xf32>
    %cst_105 = arith.constant 0.353553385 : f32
    %220 = vector.broadcast %cst_105 : f32 to vector<8x8xf32>
    %221 = arith.mulf %219, %220 : vector<8x8xf32>
    %222 = arith.addf %221, %19 : vector<8x8xf32>
    %cst_106 = arith.constant dense<0xFF800000> : vector<8xf32>
    %223 = vector.multi_reduction <maximumf>, %222, %cst_106 [1] : vector<8x8xf32> to vector<8xf32>
    %224 = vector.shape_cast %223 : vector<8xf32> to vector<8x1xf32>
    %225 = vector.broadcast %224 : vector<8x1xf32> to vector<8x8xf32>
    %226 = arith.subf %222, %225 : vector<8x8xf32>
    %227 = math.exp %226 : vector<8x8xf32>
    %cst_107 = arith.constant dense<0.000000e+00> : vector<8xf32>
    %228 = vector.multi_reduction <add>, %227, %cst_107 [1] : vector<8x8xf32> to vector<8xf32>
    %229 = vector.shape_cast %228 : vector<8xf32> to vector<8x1xf32>
    %230 = tpu.reciprocal %229 {approx = true} : vector<8x1xf32> -> vector<8x1xf32>
    %cst_108 = arith.constant dense<0.000000e+00> : vector<8x8xf32>
    %231 = tpu.matmul %227, %217, %cst_108 {dimension_numbers = #tpu.dot_dimension_numbers<[1], [0], [0], [1], [0, 0, 1, 1], [], []>} : vector<8x8xf32>, vector<8x8xf32>, vector<8x8xf32> -> vector<8x8xf32>
    %232 = vector.broadcast %230 : vector<8x1xf32> to vector<8x8xf32>
    %233 = arith.mulf %231, %232 : vector<8x8xf32>
    %234 = vector.extract_strided_slice %159 {offsets = [16, 0], sizes = [8, 32], strides = [1, 1]} : vector<32x32xf32> to vector<8x32xf32>
    %cst_109 = arith.constant dense<0.000000e+00> : vector<8x32xf32>
    %235 = tpu.matmul %233, %234, %cst_109 {dimension_numbers = #tpu.dot_dimension_numbers<[1], [0], [0], [1], [0, 0, 1, 1], [], []>} : vector<8x8xf32>, vector<8x32xf32>, vector<8x32xf32> -> vector<8x32xf32>
    %236 = arith.addf %214, %235 : vector<8x32xf32>
    %237 = vector.extract_strided_slice %163 {offsets = [0, 24], sizes = [8, 8], strides = [1, 1]} : vector<8x32xf32> to vector<8x8xf32>
    %238 = vector.extract_strided_slice %166 {offsets = [0, 24], sizes = [8, 8], strides = [1, 1]} : vector<8x32xf32> to vector<8x8xf32>
    %239 = vector.extract_strided_slice %169 {offsets = [0, 24], sizes = [8, 8], strides = [1, 1]} : vector<8x32xf32> to vector<8x8xf32>
    %240 = tpu.transpose %238, [1, 0] : vector<8x8xf32> -> vector<8x8xf32>
    %cst_110 = arith.constant dense<0.000000e+00> : vector<8x8xf32>
    %241 = tpu.matmul %237, %240, %cst_110 {dimension_numbers = #tpu.dot_dimension_numbers<[1], [0], [0], [1], [0, 0, 1, 1], [], []>} : vector<8x8xf32>, vector<8x8xf32>, vector<8x8xf32> -> vector<8x8xf32>
    %cst_111 = arith.constant 0.353553385 : f32
    %242 = vector.broadcast %cst_111 : f32 to vector<8x8xf32>
    %243 = arith.mulf %241, %242 : vector<8x8xf32>
    %244 = arith.addf %243, %19 : vector<8x8xf32>
    %cst_112 = arith.constant dense<0xFF800000> : vector<8xf32>
    %245 = vector.multi_reduction <maximumf>, %244, %cst_112 [1] : vector<8x8xf32> to vector<8xf32>
    %246 = vector.shape_cast %245 : vector<8xf32> to vector<8x1xf32>
    %247 = vector.broadcast %246 : vector<8x1xf32> to vector<8x8xf32>
    %248 = arith.subf %244, %247 : vector<8x8xf32>
    %249 = math.exp %248 : vector<8x8xf32>
    %cst_113 = arith.constant dense<0.000000e+00> : vector<8xf32>
    %250 = vector.multi_reduction <add>, %249, %cst_113 [1] : vector<8x8xf32> to vector<8xf32>
    %251 = vector.shape_cast %250 : vector<8xf32> to vector<8x1xf32>
    %252 = tpu.reciprocal %251 {approx = true} : vector<8x1xf32> -> vector<8x1xf32>
    %cst_114 = arith.constant dense<0.000000e+00> : vector<8x8xf32>
    %253 = tpu.matmul %249, %239, %cst_114 {dimension_numbers = #tpu.dot_dimension_numbers<[1], [0], [0], [1], [0, 0, 1, 1], [], []>} : vector<8x8xf32>, vector<8x8xf32>, vector<8x8xf32> -> vector<8x8xf32>
    %254 = vector.broadcast %252 : vector<8x1xf32> to vector<8x8xf32>
    %255 = arith.mulf %253, %254 : vector<8x8xf32>
    %256 = vector.extract_strided_slice %159 {offsets = [24, 0], sizes = [8, 32], strides = [1, 1]} : vector<32x32xf32> to vector<8x32xf32>
    %cst_115 = arith.constant dense<0.000000e+00> : vector<8x32xf32>
    %257 = tpu.matmul %255, %256, %cst_115 {dimension_numbers = #tpu.dot_dimension_numbers<[1], [0], [0], [1], [0, 0, 1, 1], [], []>} : vector<8x8xf32>, vector<8x32xf32>, vector<8x32xf32> -> vector<8x32xf32>
    %258 = arith.addf %236, %257 : vector<8x32xf32>
    %259 = vector.broadcast %160 : vector<1x32xf32> to vector<8x32xf32>
    %260 = arith.addf %258, %259 : vector<8x32xf32>
    %261 = arith.addf %260, %152 : vector<8x32xf32>
    %c0_116 = arith.constant 0 : index
    %c0_117 = arith.constant 0 : index
    %262 = vector.load %arg24[%c0_116, %c0_117] : memref<1x32xf32, #tpu.memory_space<vmem>>, vector<1x32xf32>
    %c0_118 = arith.constant 0 : index
    %c0_119 = arith.constant 0 : index
    %263 = vector.load %arg25[%c0_118, %c0_119] : memref<1x32xf32, #tpu.memory_space<vmem>>, vector<1x32xf32>
    %cst_120 = arith.constant dense<0.000000e+00> : vector<8xf32>
    %264 = vector.multi_reduction <add>, %261, %cst_120 [1] : vector<8x32xf32> to vector<8xf32>
    %265 = vector.shape_cast %264 : vector<8xf32> to vector<8x1xf32>
    %cst_121 = arith.constant 3.200000e+01 : f32
    %266 = vector.broadcast %cst_121 : f32 to vector<8x1xf32>
    %267 = arith.divf %265, %266 : vector<8x1xf32>
    %268 = vector.broadcast %267 : vector<8x1xf32> to vector<8x32xf32>
    %269 = arith.subf %261, %268 : vector<8x32xf32>
    %270 = arith.mulf %269, %269 : vector<8x32xf32>
    %cst_122 = arith.constant dense<0.000000e+00> : vector<8xf32>
    %271 = vector.multi_reduction <add>, %270, %cst_122 [1] : vector<8x32xf32> to vector<8xf32>
    %272 = vector.shape_cast %271 : vector<8xf32> to vector<8x1xf32>
    %cst_123 = arith.constant 3.200000e+01 : f32
    %273 = vector.broadcast %cst_123 : f32 to vector<8x1xf32>
    %274 = arith.divf %272, %273 : vector<8x1xf32>
    %275 = vector.broadcast %267 : vector<8x1xf32> to vector<8x32xf32>
    %276 = arith.subf %261, %275 : vector<8x32xf32>
    %cst_124 = arith.constant 9.99999974E-6 : f32
    %277 = vector.broadcast %cst_124 : f32 to vector<8x1xf32>
    %278 = arith.addf %274, %277 : vector<8x1xf32>
    %279 = math.rsqrt %278 : vector<8x1xf32>
    %280 = vector.broadcast %279 : vector<8x1xf32> to vector<8x32xf32>
    %281 = arith.mulf %276, %280 : vector<8x32xf32>
    %282 = vector.broadcast %262 : vector<1x32xf32> to vector<8x32xf32>
    %283 = arith.mulf %281, %282 : vector<8x32xf32>
    %284 = vector.broadcast %263 : vector<1x32xf32> to vector<8x32xf32>
    %285 = arith.addf %283, %284 : vector<8x32xf32>
    %c0_125 = arith.constant 0 : index
    %c0_126 = arith.constant 0 : index
    %286 = vector.load %arg28[%c0_125, %c0_126] : memref<32x128xf32, #tpu.memory_space<vmem>>, vector<32x128xf32>
    %cst_127 = arith.constant dense<0.000000e+00> : vector<8x128xf32>
    %287 = tpu.matmul %285, %286, %cst_127 {dimension_numbers = #tpu.dot_dimension_numbers<[1], [0], [0], [1], [0, 0, 1, 1], [], []>} : vector<8x32xf32>, vector<32x128xf32>, vector<8x128xf32> -> vector<8x128xf32>
    %c0_128 = arith.constant 0 : index
    %c0_129 = arith.constant 0 : index
    %288 = vector.load %arg29[%c0_128, %c0_129] : memref<1x128xf32, #tpu.memory_space<vmem>>, vector<1x128xf32>
    %289 = vector.broadcast %288 : vector<1x128xf32> to vector<8x128xf32>
    %290 = arith.addf %287, %289 : vector<8x128xf32>
    %cst_130 = arith.constant 0.000000e+00 : f32
    %291 = vector.broadcast %cst_130 : f32 to vector<8x128xf32>
    %292 = arith.maximumf %290, %291 : vector<8x128xf32>
    %c0_131 = arith.constant 0 : index
    %c0_132 = arith.constant 0 : index
    %293 = vector.load %arg30[%c0_131, %c0_132] : memref<128x32xf32, #tpu.memory_space<vmem>>, vector<128x32xf32>
    %cst_133 = arith.constant dense<0.000000e+00> : vector<8x32xf32>
    %294 = tpu.matmul %292, %293, %cst_133 {dimension_numbers = #tpu.dot_dimension_numbers<[1], [0], [0], [1], [0, 0, 1, 1], [], []>} : vector<8x128xf32>, vector<128x32xf32>, vector<8x32xf32> -> vector<8x32xf32>
    %c0_134 = arith.constant 0 : index
    %c0_135 = arith.constant 0 : index
    %295 = vector.load %arg31[%c0_134, %c0_135] : memref<1x32xf32, #tpu.memory_space<vmem>>, vector<1x32xf32>
    %296 = vector.broadcast %295 : vector<1x32xf32> to vector<8x32xf32>
    %297 = arith.addf %294, %296 : vector<8x32xf32>
    %298 = arith.addf %297, %285 : vector<8x32xf32>
    %c0_136 = arith.constant 0 : index
    %c0_137 = arith.constant 0 : index
    %299 = vector.load %arg26[%c0_136, %c0_137] : memref<1x32xf32, #tpu.memory_space<vmem>>, vector<1x32xf32>
    %c0_138 = arith.constant 0 : index
    %c0_139 = arith.constant 0 : index
    %300 = vector.load %arg27[%c0_138, %c0_139] : memref<1x32xf32, #tpu.memory_space<vmem>>, vector<1x32xf32>
    %cst_140 = arith.constant dense<0.000000e+00> : vector<8xf32>
    %301 = vector.multi_reduction <add>, %298, %cst_140 [1] : vector<8x32xf32> to vector<8xf32>
    %302 = vector.shape_cast %301 : vector<8xf32> to vector<8x1xf32>
    %cst_141 = arith.constant 3.200000e+01 : f32
    %303 = vector.broadcast %cst_141 : f32 to vector<8x1xf32>
    %304 = arith.divf %302, %303 : vector<8x1xf32>
    %305 = vector.broadcast %304 : vector<8x1xf32> to vector<8x32xf32>
    %306 = arith.subf %298, %305 : vector<8x32xf32>
    %307 = arith.mulf %306, %306 : vector<8x32xf32>
    %cst_142 = arith.constant dense<0.000000e+00> : vector<8xf32>
    %308 = vector.multi_reduction <add>, %307, %cst_142 [1] : vector<8x32xf32> to vector<8xf32>
    %309 = vector.shape_cast %308 : vector<8xf32> to vector<8x1xf32>
    %cst_143 = arith.constant 3.200000e+01 : f32
    %310 = vector.broadcast %cst_143 : f32 to vector<8x1xf32>
    %311 = arith.divf %309, %310 : vector<8x1xf32>
    %312 = vector.broadcast %304 : vector<8x1xf32> to vector<8x32xf32>
    %313 = arith.subf %298, %312 : vector<8x32xf32>
    %cst_144 = arith.constant 9.99999974E-6 : f32
    %314 = vector.broadcast %cst_144 : f32 to vector<8x1xf32>
    %315 = arith.addf %311, %314 : vector<8x1xf32>
    %316 = math.rsqrt %315 : vector<8x1xf32>
    %317 = vector.broadcast %316 : vector<8x1xf32> to vector<8x32xf32>
    %318 = arith.mulf %313, %317 : vector<8x32xf32>
    %319 = vector.broadcast %299 : vector<1x32xf32> to vector<8x32xf32>
    %320 = arith.mulf %318, %319 : vector<8x32xf32>
    %321 = vector.broadcast %300 : vector<1x32xf32> to vector<8x32xf32>
    %322 = arith.addf %320, %321 : vector<8x32xf32>
    %c0_145 = arith.constant 0 : index
    %c0_146 = arith.constant 0 : index
    %c0_147 = arith.constant 0 : index
    %323 = vector.load %arg32[%c0_145, %c0_146, %c0_147] : memref<1x8x32xf32, #tpu.memory_space<vmem>>, vector<1x8x32xf32>
    %324 = vector.shape_cast %323 : vector<1x8x32xf32> to vector<8x32xf32>
    %325 = vector.shape_cast %322 : vector<8x32xf32> to vector<1x8x32xf32>
    tpu.vector_store %arg32[%c0_145, %c0_146, %c0_147], %325 {strides = array<i32>} : memref<1x8x32xf32, #tpu.memory_space<vmem>>, vector<1x8x32xf32>,
    return
  }
  func.func @transform_0(%arg0: i32) -> (i32, i32, i32) {
    %c0_i32 = arith.constant 0 : i32
    %c0_i32_0 = arith.constant 0 : i32
    %c0_i32_1 = arith.constant 0 : i32
    return %arg0, %c0_i32, %c0_i32_0 : i32, i32, i32
  }
  func.func @transform_1(%arg0: i32) -> (i32, i32, i32) {
    %c0_i32 = arith.constant 0 : i32
    %c0_i32_0 = arith.constant 0 : i32
    %c0_i32_1 = arith.constant 0 : i32
    return %arg0, %c0_i32, %c0_i32_0 : i32, i32, i32
  }
  func.func @transform_2(%arg0: i32) -> (i32, i32, i32) {
    %c0_i32 = arith.constant 0 : i32
    %c0_i32_0 = arith.constant 0 : i32
    %c0_i32_1 = arith.constant 0 : i32
    return %arg0, %c0_i32, %c0_i32_0 : i32, i32, i32
  }
  func.func @transform_3(%arg0: i32) -> (i32, i32, i32) {
    %c0_i32 = arith.constant 0 : i32
    %c0_i32_0 = arith.constant 0 : i32
    %c0_i32_1 = arith.constant 0 : i32
    return %arg0, %c0_i32, %c0_i32_0 : i32, i32, i32
  }
  func.func @transform_4(%arg0: i32) -> (i32, i32, i32) {
    %c0_i32 = arith.constant 0 : i32
    %c0_i32_0 = arith.constant 0 : i32
    %c0_i32_1 = arith.constant 0 : i32
    return %arg0, %c0_i32, %c0_i32_0 : i32, i32, i32
  }
  func.func @transform_5(%arg0: i32) -> (i32, i32) {
    %c0_i32 = arith.constant 0 : i32
    %c0_i32_0 = arith.constant 0 : i32
    %c0_i32_1 = arith.constant 0 : i32
    return %c0_i32, %c0_i32_0 : i32, i32
  }
  func.func @transform_6(%arg0: i32) -> (i32, i32) {
    %c0_i32 = arith.constant 0 : i32
    %c0_i32_0 = arith.constant 0 : i32
    %c0_i32_1 = arith.constant 0 : i32
    return %c0_i32, %c0_i32_0 : i32, i32
  }
  func.func @transform_7(%arg0: i32) -> (i32, i32) {
    %c0_i32 = arith.constant 0 : i32
    %c0_i32_0 = arith.constant 0 : i32
    %c0_i32_1 = arith.constant 0 : i32
    return %c0_i32, %c0_i32_0 : i32, i32
  }
  func.func @transform_8(%arg0: i32) -> (i32, i32) {
    %c0_i32 = arith.constant 0 : i32
    %c0_i32_0 = arith.constant 0 : i32
    %c0_i32_1 = arith.constant 0 : i32
    return %c0_i32, %c0_i32_0 : i32, i32
  }
  func.func @transform_9(%arg0: i32) -> (i32, i32) {
    %c0_i32 = arith.constant 0 : i32
    %c0_i32_0 = arith.constant 0 : i32
    %c0_i32_1 = arith.constant 0 : i32
    return %c0_i32, %c0_i32_0 : i32, i32
  }
  func.func @transform_10(%arg0: i32) -> (i32, i32) {
    %c0_i32 = arith.constant 0 : i32
    %c0_i32_0 = arith.constant 0 : i32
    %c0_i32_1 = arith.constant 0 : i32
    return %c0_i32, %c0_i32_0 : i32, i32
  }
  func.func @transform_11(%arg0: i32) -> (i32, i32) {
    %c0_i32 = arith.constant 0 : i32
    %c0_i32_0 = arith.constant 0 : i32
    %c0_i32_1 = arith.constant 0 : i32
    return %c0_i32, %c0_i32_0 : i32, i32
  }
  func.func @transform_12(%arg0: i32) -> (i32, i32) {
    %c0_i32 = arith.constant 0 : i32
    %c0_i32_0 = arith.constant 0 : i32
    %c0_i32_1 = arith.constant 0 : i32
    return %c0_i32, %c0_i32_0 : i32, i32
  }
  func.func @transform_13(%arg0: i32) -> (i32, i32) {
    %c0_i32 = arith.constant 0 : i32
    %c0_i32_0 = arith.constant 0 : i32
    %c0_i32_1 = arith.constant 0 : i32
    return %c0_i32, %c0_i32_0 : i32, i32
  }
  func.func @transform_14(%arg0: i32) -> (i32, i32) {
    %c0_i32 = arith.constant 0 : i32
    %c0_i32_0 = arith.constant 0 : i32
    %c0_i32_1 = arith.constant 0 : i32
    return %c0_i32, %c0_i32_0 : i32, i32
  }
  func.func @transform_15(%arg0: i32) -> (i32, i32) {
    %c0_i32 = arith.constant 0 : i32
    %c0_i32_0 = arith.constant 0 : i32
    %c0_i32_1 = arith.constant 0 : i32
    return %c0_i32, %c0_i32_0 : i32, i32
  }
  func.func @transform_16(%arg0: i32) -> (i32, i32) {
    %c0_i32 = arith.constant 0 : i32
    %c0_i32_0 = arith.constant 0 : i32
    %c0_i32_1 = arith.constant 0 : i32
    return %c0_i32, %c0_i32_0 : i32, i32
  }
  func.func @transform_17(%arg0: i32) -> (i32, i32) {
    %c0_i32 = arith.constant 0 : i32
    %c0_i32_0 = arith.constant 0 : i32
    %c0_i32_1 = arith.constant 0 : i32
    return %c0_i32, %c0_i32_0 : i32, i32
  }
  func.func @transform_18(%arg0: i32) -> (i32, i32) {
    %c0_i32 = arith.constant 0 : i32
    %c0_i32_0 = arith.constant 0 : i32
    %c0_i32_1 = arith.constant 0 : i32
    return %c0_i32, %c0_i32_0 : i32, i32
  }
  func.func @transform_19(%arg0: i32) -> (i32, i32) {
    %c0_i32 = arith.constant 0 : i32
    %c0_i32_0 = arith.constant 0 : i32
    %c0_i32_1 = arith.constant 0 : i32
    return %c0_i32, %c0_i32_0 : i32, i32
  }
  func.func @transform_20(%arg0: i32) -> (i32, i32) {
    %c0_i32 = arith.constant 0 : i32
    %c0_i32_0 = arith.constant 0 : i32
    %c0_i32_1 = arith.constant 0 : i32
    return %c0_i32, %c0_i32_0 : i32, i32
  }
  func.func @transform_21(%arg0: i32) -> (i32, i32) {
    %c0_i32 = arith.constant 0 : i32
    %c0_i32_0 = arith.constant 0 : i32
    %c0_i32_1 = arith.constant 0 : i32
    return %c0_i32, %c0_i32_0 : i32, i32
  }
  func.func @transform_22(%arg0: i32) -> (i32, i32) {
    %c0_i32 = arith.constant 0 : i32
    %c0_i32_0 = arith.constant 0 : i32
    %c0_i32_1 = arith.constant 0 : i32
    return %c0_i32, %c0_i32_0 : i32, i32
  }
  func.func @transform_23(%arg0: i32) -> (i32, i32) {
    %c0_i32 = arith.constant 0 : i32
    %c0_i32_0 = arith.constant 0 : i32
    %c0_i32_1 = arith.constant 0 : i32
    return %c0_i32, %c0_i32_0 : i32, i32
  }
  func.func @transform_24(%arg0: i32) -> (i32, i32) {
    %c0_i32 = arith.constant 0 : i32
    %c0_i32_0 = arith.constant 0 : i32
    %c0_i32_1 = arith.constant 0 : i32
    return %c0_i32, %c0_i32_0 : i32, i32
  }
  func.func @transform_25(%arg0: i32) -> (i32, i32) {
    %c0_i32 = arith.constant 0 : i32
    %c0_i32_0 = arith.constant 0 : i32
    %c0_i32_1 = arith.constant 0 : i32
    return %c0_i32, %c0_i32_0 : i32, i32
  }
  func.func @transform_26(%arg0: i32) -> (i32, i32) {
    %c0_i32 = arith.constant 0 : i32
    %c0_i32_0 = arith.constant 0 : i32
    %c0_i32_1 = arith.constant 0 : i32
    return %c0_i32, %c0_i32_0 : i32, i32
  }
  func.func @transform_27(%arg0: i32) -> (i32, i32) {
    %c0_i32 = arith.constant 0 : i32
    %c0_i32_0 = arith.constant 0 : i32
    %c0_i32_1 = arith.constant 0 : i32
    return %c0_i32, %c0_i32_0 : i32, i32
  }
  func.func @transform_28(%arg0: i32) -> (i32, i32) {
    %c0_i32 = arith.constant 0 : i32
    %c0_i32_0 = arith.constant 0 : i32
    %c0_i32_1 = arith.constant 0 : i32
    return %c0_i32, %c0_i32_0 : i32, i32
  }
  func.func @transform_29(%arg0: i32) -> (i32, i32) {
    %c0_i32 = arith.constant 0 : i32
    %c0_i32_0 = arith.constant 0 : i32
    %c0_i32_1 = arith.constant 0 : i32
    return %c0_i32, %c0_i32_0 : i32, i32
  }
  func.func @transform_30(%arg0: i32) -> (i32, i32) {
    %c0_i32 = arith.constant 0 : i32
    %c0_i32_0 = arith.constant 0 : i32
    %c0_i32_1 = arith.constant 0 : i32
    return %c0_i32, %c0_i32_0 : i32, i32
  }
  func.func @transform_31(%arg0: i32) -> (i32, i32, i32) {
    %c0_i32 = arith.constant 0 : i32
    %c0_i32_0 = arith.constant 0 : i32
    %c0_i32_1 = arith.constant 0 : i32
    return %arg0, %c0_i32, %c0_i32_0 : i32, i32, i32
  }
}

</mosaic_0001>

<bundles_post_ra>
// kernel: decoder_block_forward.1
= control target key start
LH: loop header
LB: loop body
LE: loop exit
PB: predicated region body
PF: predicated region fallthrough
CT: control target
= control target key end

     0   :  { %s5770_s6 = smov 1   ;;  %s5771_s10 = smov 2   ;;  %s6673_s0 = inlined_call_operand.smem [shape: u32[32], index: -1, kind: input, shape index: {}] }
   0x1   :  { %s5837_s5 = sld [smem:[%s6673_s0]]   ;;  %s5772_s14 = smov 3  }
   0x2   :  { %s5842_s9 = sld [smem:[%s6673_s0 + %s5770_s6]]   ;;  %s5773_s18 = smov 4  }
   0x3   :  { %s5847_s13 = sld [smem:[%s6673_s0 + %s5771_s10]]   ;;  %s5774_s22 = smov 5  }
   0x4   :  { %s5852_s17 = sld [smem:[%s6673_s0 + %s5772_s14]]   ;;  %s5775_s26 = smov 6  }
   0x5   :  { %s5857_s21 = sld [smem:[%s6673_s0 + %s5773_s18]]   ;;  %s5776_s30 = smov 7  }
   0x6   :  { %s5862_s25 = sld [smem:[%s6673_s0 + %s5774_s22]]   ;;  %s5777_s4 = smov 8  }
   0x7   :  { %6702 = sst [smem:[#allocation44_spill]] %s5837_s5  ;;  %s5778_s10 = smov 9  }
   0x8   :  { %6703 = sst [smem:[#allocation45_spill]] %s5842_s9  ;;  %s5779_s15 = smov 10  }
   0x9   :  { %6704 = sst [smem:[#allocation46_spill]] %s5847_s13  ;;  %s5780_s20 = smov 11  }
   0xa   :  { %6705 = sst [smem:[#allocation47_spill]] %s5852_s17  ;;  %s5782_s1 = smov 13  }
   0xb   :  { %6706 = sst [smem:[#allocation48_spill]] %s5857_s21  ;;  %s5783_s7 = smov 14  }
   0xc   :  { %6707 = sst [smem:[#allocation49_spill]] %s5862_s25  ;;  %s5785_s22 = smov 16  }
   0xd   :  { %s5867_s29 = sld [smem:[%s6673_s0 + %s5775_s26]]   ;;  %s5781_s26 = smov 12  }
   0xe   :  { %s5872_s3 = sld [smem:[%s6673_s0 + %s5776_s30]]   ;;  %s5786_s28 = smov 17  }
   0xf   :  { %s5877_s8 = sld [smem:[%s6673_s0 + %s5777_s4]]  }
  0x10   :  { %s5882_s14 = sld [smem:[%s6673_s0 + %s5778_s10]]  }
  0x11   :  { %s5887_s19 = sld [smem:[%s6673_s0 + %s5779_s15]]   ;;  %s5784_s15 = smov 15  }
  0x12   :  { %s5892_s24 = sld [smem:[%s6673_s0 + %s5780_s20]]  }
  0x13   :  { %6708 = sst [smem:[#allocation50_spill]] %s5867_s29 }
  0x14   :  { %6709 = sst [smem:[#allocation51_spill]] %s5872_s3 }
  0x15   :  { %s5897_s30 = sld [smem:[%s6673_s0 + %s5781_s26]]  }
  0x16   :  { %6710 = sst [smem:[#allocation52_spill]] %s5882_s14 }
  0x17   :  { %6711 = sst [smem:[#allocation53_spill]] %s5887_s19 }
  0x18   :  { %6712 = sst [smem:[#allocation54_spill]] %s5892_s24 }
  0x19   :  { %s5902_s6 = sld [smem:[%s6673_s0 + %s5782_s1]]  }
  0x1a   :  { %s5907_s12 = sld [smem:[%s6673_s0 + %s5783_s7]]   ;;  %s5787_s7 = smov 18  }
  0x1b   :  { %s5912_s20 = sld [smem:[%s6673_s0 + %s5784_s15]]   ;;  %s5788_s15 = smov 19  }
  0x1c   :  { %s5917_s27 = sld [smem:[%s6673_s0 + %s5785_s22]]   ;;  %s5789_s22 = smov 20  }
  0x1d   :  { %s5922_s4 = sld [smem:[%s6673_s0 + %s5786_s28]]   ;;  %s5790_s28 = smov 21  }
  0x1e   :  { %s5927_s17 = sld [smem:[%s6673_s0 + %s5787_s7]]   ;;  %s5791_s7 = smov 22  }
  0x1f   :  { %6713 = sst [smem:[#allocation55_spill]] %s5902_s6 }
  0x20   :  { %6714 = sst [smem:[#allocation56_spill]] %s5907_s12 }
  0x21   :  { %s5932_s13 = sld [smem:[%s6673_s0 + %s5788_s15]]   ;;  %s5792_s15 = smov 23  }
  0x22   :  { %s5937_s9 = sld [smem:[%s6673_s0 + %s5789_s22]]   ;;  %s5793_s22 = smov 24  }
  0x23   :  { %6715 = sst [smem:[#allocation57_spill]] %s5922_s4 }
  0x24   :  { %s5942_s6 = sld [smem:[%s6673_s0 + %s5790_s28]]   ;;  %s5794_s28 = smov 25  }
  0x25   :  { %s5947_s24 = sld [smem:[%s6673_s0 + %s5791_s7]]   ;;  %s5795_s7 = smov 26  }
  0x26   :  { %s5952_s21 = sld [smem:[%s6673_s0 + %s5792_s15]]   ;;  %s5796_s15 = smov 27  }
  0x27   :  { %s5957_s29 = sld [smem:[%s6673_s0 + %s5793_s22]]   ;;  %s5797_s22 = smov 28  }
  0x28   :  { %s5962_s14 = sld [smem:[%s6673_s0 + %s5794_s28]]   ;;  %s5798_s28 = smov 29  }
  0x29   :  { %s5967_s3 = sld [smem:[%s6673_s0 + %s5795_s7]]   ;;  %s5799_s7 = smov 30  }
  0x2a   :  { %s5972_s5 = sld [smem:[%s6673_s0 + %s5796_s15]]   ;;  %s5800_s15 = smov 31  }
  0x2b   :  { %s5977_s25 = sld [smem:[%s6673_s0 + %s5797_s22]]  }
  0x2c   :  { %6716 = sst [smem:[#allocation58_spill]] %s5952_s21 }
  0x2d   :  { %s5987_s21 = sld [smem:[%s6673_s0 + %s5799_s7]]  }
  0x2e   :  { %6717 = sst [smem:[#allocation59_spill]] %s5962_s14 }
  0x2f   :  { %6718 = sst [smem:[#allocation60_spill]] %s5967_s3 }
  0x30   :  { %6719 = sst [smem:[#allocation61_spill]] %s5972_s5 }
  0x31   :  { %s5982_s14 = sld [smem:[%s6673_s0 + %s5798_s28]]  }
  0x32   :  { %s5992_s5 = sld [smem:[%s6673_s0 + %s5800_s15]]  }
  0x33   :  { %68 = vsyncpa [#allocation3], 0 }
  0x34   :  { %69 = vsyncpa [#allocation6], 0 }
  0x35   :  { %70 = vsyncpa [#allocation9], 0 }
  0x36   :  { %71 = vsyncpa [#allocation12], 0 }
  0x37   :  { %72 = vsyncpa [#allocation15], 0 }
  0x38   :  { %73 = vsyncpa [#allocation18], 0 }
  0x39   :  { %74 = vsyncpa [#allocation21], 0 }
  0x3a   :  { %75 = vsyncpa [#allocation24], 0 }
  0x3b   :  { %76 = vsyncpa [#allocation27], 0 }
  0x3c   :  { %77 = vsyncpa [#allocation30], 0 }
  0x3d   :  { %78 = vsyncpa [#allocation4], 0 }
  0x3e   :  { %80 = vsyncpa [#allocation4 + $0x1], 0  ;;  %s5994_s22 = smov 0   ;;  %s5996_s23 = smov 0  }
  0x3f   :  { %s5998_s26 = smov 0   ;;  %s6000_s0 = smov 0  }
  0x40 LB: > { %s6720_s4 = sld [smem:[#allocation57_spill]]  ;;  %s6721_s3 = sld [smem:[#allocation60_spill]]  ;;  %s5768_s0 = sphi %s6000_s0, %s6775_s0   ;;  %s5764_s26 = sphi %s5998_s26, %s6777_s26   ;;  %s5760_s23 = sphi %s5996_s23, %s6779_s23   ;;  %s5756_s22 = sphi %s5994_s22, %s6778_s22  }
  0x41   : > { %s6722_s19 = sld [smem:[#allocation53_spill]]  ;;  %s6723_s12 = sld [smem:[#allocation56_spill]] }
  0x42   : > { %6724 = sst [smem:[#allocation62_spill]] %s5756_s22  ;;  %s6015_s28 = sadd.s32 4294967295, %s5768_s0  }
  0x43   : > { %6725 = sst [smem:[#allocation63_spill]] %s5764_s26  ;;  %s4322_s1 = sadd.s32 4294967294, %s5768_s0  }
  0x44   : > { %s6019_s2 = sadd.s32 1, %s5768_s0   ;;  %s769_s7 = sadd.s32 1, %s5764_s26 }
  0x45   : > { %6726 = sst [smem:[#allocation64_spill]] %s6019_s2  ;;  %s766_s10 = ssub.s32 %s5768_s0, %s6019_s2 }
  0x46   : > { %p779_p0 = scmp.ne.s32.totalorder %s5764_s26, %s5760_s23  ;;  %p767_p1 = scmp.eq.s32.totalorder %s766_s10, 0 }
  0x47   : > { %p780_p2 = scmp.eq.s32.totalorder %s6015_s28, 1  ;;  %p785_p3 = scmp.ne.s32.totalorder %s5760_s23, %s5756_s22 }
  0x48   : > { %p786_p4 = scmp.eq.s32.totalorder %s4322_s1, 1  ;;  %p4323_p7 = scmp.ge.s32.totalorder %s5768_s0, 1 }
  0x49   : > { %s6030_s11 = scalar_select %p767_p1, %s5764_s26, %s769_s7  }
  0x4a   : > { %p6032_p5 = por %p780_p2, %p779_p0  ;;  %p6036_p6 = por %p786_p4, %p785_p3 }
  0x4b   : > { %6727 = sst [smem:[#allocation65_spill]] %s6030_s11  ;;  %p793_p8 = scmp.lt.s32.totalorder %s5768_s0, 3 }
  0x4c   : > { %s6728_s15 = scalar_select %p6032_p5, 1, 0 }
  0x4d   : > { %s6729_s16 = scalar_select %p6036_p6, 1, 0 }
  0x4e   : > { %p6687_p9 = scmp.eq.s32.totalorder %s6015_s28, 0  ;;  %p6043_p10 = pnand %p4323_p7, %p793_p8 }
  0x4f   : > { %6730 = sst [smem:[#allocation66_spill]] %s6729_s16  ;;  %s5801_s1 = smov [#allocation5]  }
  0x50   : > { %s6731_s18 = scalar_select %p6043_p10, 1, 0 }
  0x51   : > { %s829_s7 = sshll.u32 %s5801_s1, 4  ;;  %p4905_p11 = pneg %p6043_p10  ;;  %s830_s7 = int_to_ptr.vmem [resolvable:$true] %s829_s7 }
  0x52   : > { %s5802_s10 = smov [#allocation8]   ;;  %s5803_s2 = smov [#allocation11]  }
  0x53   : > { %s857_s11 = sshll.u32 %s5802_s10, 4  ;;  %p6051_p12 = pnand %p6687_p9, %p4905_p11  ;;  %s6055_s11 = int_to_ptr.vmem [resolvable:$true] %s857_s11 }
  0x54   : > { %s881_s16 = sshll.u32 %s5803_s2, 4  ;;  %s5134_s22 = scalar_lea.hbm %s6722_s19, 16  ;;  %s6057_s16 = int_to_ptr.vmem [resolvable:$true] %s881_s16 }
  0x55   : > { %p5135_p13 = scmp.ne.s32.totalorder %s6722_s19, %s5134_s22  ;;  %p6063_p0 = pneg %p6051_p12 }
  0x56   : > { %p5141_p3 = scmp.lt.u32.totalorder %s5134_s22, %s6722_s19 }
  0x57   : > { %p5137_p1 = pnand %p6063_p0, %p5135_p13 }
  0x59   : > { %p5138_p2 = pneg %p5137_p1 }
  0x5b   : > { %p5143_p4 = pnand %p5141_p3, %p5138_p2 }
  0x5d   : > { %5146 = shalt.err (!%p5143_p4)
}
  0x5e   : > { %s5147_s10 = scalar_lea.vmem %s830_s7, 16  ;;  %s5154_s2 = scalar_lea.vmem %s830_s7, 32 }
  0x5f   : > { %p5148_p7 = scmp.ne.s32.totalorder %s830_s7, %s5147_s10  ;;  %p5155_p9 = scmp.lt.s32.totalorder %s830_s7, %s830_s7 }
  0x60   : > { %p5156_p6 = scmp.lt.s32.totalorder %s5154_s2, %s5147_s10 }
  0x61   : > { %p5150_p8 = pnand %p5148_p7, %p6063_p0 }
  0x62   : > { %p5157_p5 = por %p5156_p6, %p5155_p9 }
  0x63   : > { %p5151_p11 = pneg %p5150_p8 }
  0x65   : > { %p5158_p10 = pnand %p5157_p5, %p5151_p11 }
  0x67   : > { %5161 = shalt.err (!%p5158_p10)
}
  0x68   : > { %4911 = dma.hbm_to_vmem [thread:$0]  (!%p6051_p12), %s6722_s19, 16, %s830_s7, [#allocation6]  }
  0x69   : > { %s5162_s22 = scalar_lea.hbm %s6723_s12, 16 }
  0x6a   : > { %p5163_p13 = scmp.ne.s32.totalorder %s6723_s12, %s5162_s22  ;;  %p5169_p3 = scmp.lt.u32.totalorder %s5162_s22, %s6723_s12 }
  0x6c   : > { %p5165_p1 = pnand %p5163_p13, %p6063_p0 }
  0x6e   : > { %p5166_p2 = pneg %p5165_p1 }
  0x70   : > { %p5171_p4 = pnand %p5169_p3, %p5166_p2 }
  0x72   : > { %5174 = shalt.err (!%p5171_p4)
}
  0x73   : > { %s5175_s10 = scalar_lea.vmem %s6055_s11, 16  ;;  %s5182_s2 = scalar_lea.vmem %s6055_s11, 32 }
  0x74   : > { %p5176_p5 = scmp.ne.s32.totalorder %s6055_s11, %s5175_s10  ;;  %p5183_p10 = scmp.lt.s32.totalorder %s6055_s11, %s6055_s11 }
  0x75   : > { %p5184_p7 = scmp.lt.s32.totalorder %s5182_s2, %s5175_s10 }
  0x76   : > { %p5178_p6 = pnand %p5176_p5, %p6063_p0 }
  0x77   : > { %p5185_p8 = por %p5184_p7, %p5183_p10 }
  0x78   : > { %p5179_p9 = pneg %p5178_p6 }
  0x7a   : > { %p5186_p11 = pnand %p5185_p8, %p5179_p9 }
  0x7c   : > { %5189 = shalt.err (!%p5186_p11)
}
  0x7d   : > { %4917 = dma.hbm_to_vmem [thread:$0]  (!%p6051_p12), %s6723_s12, 16, %s6055_s11, [#allocation9]  }
  0x7e   : > { %s5190_s7 = scalar_lea.hbm %s5917_s27, 16 }
  0x7f   : > { %p5191_p13 = scmp.ne.s32.totalorder %s5917_s27, %s5190_s7  ;;  %p5197_p3 = scmp.lt.u32.totalorder %s5190_s7, %s5917_s27 }
  0x81   : > { %p5193_p1 = pnand %p5191_p13, %p6063_p0 }
  0x83   : > { %p5194_p2 = pneg %p5193_p1 }
  0x85   : > { %p5199_p4 = pnand %p5197_p3, %p5194_p2 }
  0x87   : > { %5202 = shalt.err (!%p5199_p4)
}
  0x88   : > { %s5203_s22 = scalar_lea.vmem %s6057_s16, 16  ;;  %s5210_s10 = scalar_lea.vmem %s6057_s16, 32 }
  0x89   : > { %p5204_p5 = scmp.ne.s32.totalorder %s6057_s16, %s5203_s22  ;;  %p5211_p10 = scmp.lt.s32.totalorder %s6057_s16, %s6057_s16 }
  0x8a   : > { %p5212_p7 = scmp.lt.s32.totalorder %s5210_s10, %s5203_s22 }
  0x8b   : > { %p5206_p6 = pnand %p5204_p5, %p6063_p0 }
  0x8c   : > { %p5213_p8 = por %p5212_p7, %p5211_p10 }
  0x8d   : > { %p5207_p9 = pneg %p5206_p6 }
  0x8f   : > { %p5214_p11 = pnand %p5213_p8, %p5207_p9 }
  0x91   : > { %5217 = shalt.err (!%p5214_p11)
}
  0x92   : > { %4923 = dma.hbm_to_vmem [thread:$0]  (!%p6051_p12), %s5917_s27, 16, %s6057_s16, [#allocation12]  }
  0x93   : > { %s5804_s11 = smov [#allocation14]   ;;  %s5805_s7 = smov [#allocation17]  }
  0x94   : > { %s905_s2 = sshll.u32 %s5804_s11, 4  ;;  %s929_s12 = sshll.u32 %s5805_s7, 4  ;;  %s906_s2 = int_to_ptr.vmem [resolvable:$true] %s905_s2  ;;  %s930_s12 = int_to_ptr.vmem [resolvable:$true] %s929_s12 }
  0x95   : > { %s5218_s19 = scalar_lea.hbm %s5927_s17, 16 }
  0x96   : > { %p5219_p13 = scmp.ne.s32.totalorder %s5927_s17, %s5218_s19  ;;  %p5225_p3 = scmp.lt.u32.totalorder %s5218_s19, %s5927_s17 }
  0x98   : > { %p5221_p1 = pnand %p5219_p13, %p6063_p0 }
  0x9a   : > { %p5222_p2 = pneg %p5221_p1 }
  0x9c   : > { %p5227_p4 = pnand %p5225_p3, %p5222_p2 }
  0x9e   : > { %5230 = shalt.err (!%p5227_p4)
}
  0x9f   : > { %s5231_s22 = scalar_lea.vmem %s906_s2, 16  ;;  %s5238_s16 = scalar_lea.vmem %s906_s2, 32 }
  0xa0   : > { %p5232_p5 = scmp.ne.s32.totalorder %s906_s2, %s5231_s22  ;;  %p5239_p10 = scmp.lt.s32.totalorder %s906_s2, %s906_s2 }
  0xa1   : > { %p5240_p7 = scmp.lt.s32.totalorder %s5238_s16, %s5231_s22 }
  0xa2   : > { %p5234_p6 = pnand %p5232_p5, %p6063_p0 }
  0xa3   : > { %p5241_p8 = por %p5240_p7, %p5239_p10 }
  0xa4   : > { %p5235_p9 = pneg %p5234_p6 }
  0xa6   : > { %p5242_p11 = pnand %p5241_p8, %p5235_p9 }
  0xa8   : > { %5245 = shalt.err (!%p5242_p11)
}
  0xa9   : > { %4929 = dma.hbm_to_vmem [thread:$0]  (!%p6051_p12), %s5927_s17, 16, %s906_s2, [#allocation15]  }
  0xaa   : > { %s5246_s19 = scalar_lea.hbm %s5937_s9, 16 }
  0xab   : > { %p5247_p13 = scmp.ne.s32.totalorder %s5937_s9, %s5246_s19  ;;  %p5253_p3 = scmp.lt.u32.totalorder %s5246_s19, %s5937_s9 }
  0xad   : > { %p5249_p1 = pnand %p5247_p13, %p6063_p0 }
  0xaf   : > { %p5250_p2 = pneg %p5249_p1 }
  0xb1   : > { %p5255_p4 = pnand %p5253_p3, %p5250_p2 }
  0xb3   : > { %5258 = shalt.err (!%p5255_p4)
}
  0xb4   : > { %s5259_s10 = scalar_lea.vmem %s930_s12, 16  ;;  %s5266_s11 = scalar_lea.vmem %s930_s12, 32 }
  0xb5   : > { %p5260_p5 = scmp.ne.s32.totalorder %s930_s12, %s5259_s10  ;;  %p5267_p10 = scmp.lt.s32.totalorder %s930_s12, %s930_s12 }
  0xb6   : > { %p5268_p7 = scmp.lt.s32.totalorder %s5266_s11, %s5259_s10 }
  0xb7   : > { %p5262_p6 = pnand %p5260_p5, %p6063_p0 }
  0xb8   : > { %p5269_p8 = por %p5268_p7, %p5267_p10 }
  0xb9   : > { %p5263_p9 = pneg %p5262_p6 }
  0xbb   : > { %p5270_p11 = pnand %p5269_p8, %p5263_p9 }
  0xbd   : > { %5273 = shalt.err (!%p5270_p11)
}
  0xbe   : > { %4935 = dma.hbm_to_vmem [thread:$0]  (!%p6051_p12), %s5937_s9, 16, %s930_s12, [#allocation18]  }
  0xbf   : > { %s5806_s2 = smov [#allocation20]   ;;  %s5807_s22 = smov [#allocation23]  }
  0xc0   : > { %s951_s7 = sshll.u32 %s5806_s2, 4  ;;  %s973_s16 = sshll.u32 %s5807_s22, 4  ;;  %s952_s7 = int_to_ptr.vmem [resolvable:$true] %s951_s7  ;;  %s974_s16 = int_to_ptr.vmem [resolvable:$true] %s973_s16 }
  0xc1   : > { %s5274_s19 = scalar_lea.hbm %s5947_s24, 16 }
  0xc2   : > { %p5275_p13 = scmp.ne.s32.totalorder %s5947_s24, %s5274_s19  ;;  %p5281_p3 = scmp.lt.u32.totalorder %s5274_s19, %s5947_s24 }
  0xc4   : > { %p5277_p1 = pnand %p5275_p13, %p6063_p0 }
  0xc6   : > { %p5278_p2 = pneg %p5277_p1 }
  0xc8   : > { %p5283_p4 = pnand %p5281_p3, %p5278_p2 }
  0xca   : > { %5286 = shalt.err (!%p5283_p4)
}
  0xcb   : > { %s5287_s10 = scalar_lea.vmem %s952_s7, 16  ;;  %s5294_s12 = scalar_lea.vmem %s952_s7, 32 }
  0xcc   : > { %p5288_p5 = scmp.ne.s32.totalorder %s952_s7, %s5287_s10  ;;  %p5295_p10 = scmp.lt.s32.totalorder %s952_s7, %s952_s7 }
  0xcd   : > { %p5296_p7 = scmp.lt.s32.totalorder %s5294_s12, %s5287_s10 }
  0xce   : > { %p5290_p6 = pnand %p5288_p5, %p6063_p0 }
  0xcf   : > { %p5297_p8 = por %p5296_p7, %p5295_p10 }
  0xd0   : > { %p5291_p9 = pneg %p5290_p6 }
  0xd2   : > { %p5298_p11 = pnand %p5297_p8, %p5291_p9 }
  0xd4   : > { %5301 = shalt.err (!%p5298_p11)
}
  0xd5   : > { %4941 = dma.hbm_to_vmem [thread:$0]  (!%p6051_p12), %s5947_s24, 16, %s952_s7, [#allocation21]  }
  0xd6   : > { %s5302_s11 = scalar_lea.hbm %s5957_s29, 16 }
  0xd7   : > { %p5303_p13 = scmp.ne.s32.totalorder %s5957_s29, %s5302_s11  ;;  %p5309_p3 = scmp.lt.u32.totalorder %s5302_s11, %s5957_s29 }
  0xd9   : > { %p5305_p1 = pnand %p5303_p13, %p6063_p0 }
  0xdb   : > { %p5306_p2 = pneg %p5305_p1 }
  0xdd   : > { %p5311_p4 = pnand %p5309_p3, %p5306_p2 }
  0xdf   : > { %5314 = shalt.err (!%p5311_p4)
}
  0xe0   : > { %s5315_s2 = scalar_lea.vmem %s974_s16, 16  ;;  %s5322_s22 = scalar_lea.vmem %s974_s16, 32 }
  0xe1   : > { %p5316_p5 = scmp.ne.s32.totalorder %s974_s16, %s5315_s2  ;;  %p5323_p10 = scmp.lt.s32.totalorder %s974_s16, %s974_s16 }
  0xe2   : > { %p5324_p7 = scmp.lt.s32.totalorder %s5322_s22, %s5315_s2 }
  0xe3   : > { %p5318_p6 = pnand %p5316_p5, %p6063_p0 }
  0xe4   : > { %p5325_p8 = por %p5324_p7, %p5323_p10 }
  0xe5   : > { %p5319_p9 = pneg %p5318_p6 }
  0xe7   : > { %p5326_p11 = pnand %p5325_p8, %p5319_p9 }
  0xe9   : > { %5329 = shalt.err (!%p5326_p11)
}
  0xea   : > { %4947 = dma.hbm_to_vmem [thread:$0]  (!%p6051_p12), %s5957_s29, 16, %s974_s16, [#allocation24]  }
  0xeb   : > { %s5808_s7 = smov [#allocation26]   ;;  %s5809_s10 = smov [#allocation29]  }
  0xec   : > { %s995_s19 = sshll.u32 %s5808_s7, 4  ;;  %s1019_s12 = sshll.u32 %s5809_s10, 4  ;;  %s996_s19 = int_to_ptr.vmem [resolvable:$true] %s995_s19  ;;  %s1020_s12 = int_to_ptr.vmem [resolvable:$true] %s1019_s12 }
  0xed   : > { %s5330_s11 = scalar_lea.hbm %s6721_s3, 16 }
  0xee   : > { %p5331_p13 = scmp.ne.s32.totalorder %s6721_s3, %s5330_s11  ;;  %p5337_p3 = scmp.lt.u32.totalorder %s5330_s11, %s6721_s3 }
  0xf0   : > { %p5333_p1 = pnand %p5331_p13, %p6063_p0 }
  0xf2   : > { %p5334_p2 = pneg %p5333_p1 }
  0xf4   : > { %p5339_p4 = pnand %p5337_p3, %p5334_p2 }
  0xf6   : > { %5342 = shalt.err (!%p5339_p4)
}
  0xf7   : > { %s5343_s2 = scalar_lea.vmem %s996_s19, 16  ;;  %s5350_s16 = scalar_lea.vmem %s996_s19, 32 }
  0xf8   : > { %p5344_p5 = scmp.ne.s32.totalorder %s996_s19, %s5343_s2  ;;  %p5351_p10 = scmp.lt.s32.totalorder %s996_s19, %s996_s19 }
  0xf9   : > { %p5352_p7 = scmp.lt.s32.totalorder %s5350_s16, %s5343_s2 }
  0xfa   : > { %p5346_p6 = pnand %p5344_p5, %p6063_p0 }
  0xfb   : > { %p5353_p8 = por %p5352_p7, %p5351_p10 }
  0xfc   : > { %p5347_p9 = pneg %p5346_p6 }
  0xfe   : > { %p5354_p11 = pnand %p5353_p8, %p5347_p9 }
 0x100   : > { %5357 = shalt.err (!%p5354_p11)
}
 0x101   : > { %4953 = dma.hbm_to_vmem [thread:$0]  (!%p6051_p12), %s6721_s3, 16, %s996_s19, [#allocation27]  }
 0x102   : > { %s5358_s22 = scalar_lea.hbm %s5977_s25, 16 }
 0x103   : > { %p5359_p13 = scmp.ne.s32.totalorder %s5977_s25, %s5358_s22  ;;  %p5365_p3 = scmp.lt.u32.totalorder %s5358_s22, %s5977_s25 }
 0x105   : > { %p5361_p1 = pnand %p5359_p13, %p6063_p0 }
 0x107   : > { %p5362_p2 = pneg %p5361_p1 }
 0x109   : > { %p5367_p4 = pnand %p5365_p3, %p5362_p2 }
 0x10b   : > { %5370 = shalt.err (!%p5367_p4)
}
 0x10c   : > { %s5371_s7 = scalar_lea.vmem %s1020_s12, 16  ;;  %s5378_s10 = scalar_lea.vmem %s1020_s12, 32 }
 0x10d   : > { %p5372_p5 = scmp.ne.s32.totalorder %s1020_s12, %s5371_s7  ;;  %p5379_p10 = scmp.lt.s32.totalorder %s1020_s12, %s1020_s12 }
 0x10e   : > { %p5380_p7 = scmp.lt.s32.totalorder %s5378_s10, %s5371_s7 }
 0x10f   : > { %p5374_p6 = pnand %p5372_p5, %p6063_p0 }
 0x110   : > { %p5381_p8 = por %p5380_p7, %p5379_p10 }
 0x111   : > { %p5375_p9 = pneg %p5374_p6 }
 0x113   : > { %p5382_p11 = pnand %p5381_p8, %p5375_p9 }
 0x115   : > { %5385 = shalt.err (!%p5382_p11)
}
 0x116   : > { %4959 = dma.hbm_to_vmem [thread:$0]  (!%p6051_p12), %s5977_s25, 16, %s1020_s12, [#allocation30]  }
 0x117   : > { %s5810_s19 = smov [#allocation2]   ;;  %s5811_s2 = smov [#allocation7]  }
 0x118   : > { %s815_s11 = sshll.u32 %s5810_s19, 4  ;;  %s843_s16 = sshll.u32 %s5811_s2, 4  ;;  %s816_s11 = int_to_ptr.vmem [resolvable:$true] %s815_s11  ;;  %s844_s16 = int_to_ptr.vmem [resolvable:$true] %s843_s16 }
 0x119   : > { %s5386_s22 = scalar_lea.hbm %s5877_s8, 16 }
 0x11a   : > { %p5387_p13 = scmp.ne.s32.totalorder %s5877_s8, %s5386_s22  ;;  %p5393_p3 = scmp.lt.u32.totalorder %s5386_s22, %s5877_s8 }
 0x11c   : > { %p5389_p1 = pnand %p5387_p13, %p6063_p0 }
 0x11e   : > { %p5390_p2 = pneg %p5389_p1 }
 0x120   : > { %p5395_p4 = pnand %p5393_p3, %p5390_p2 }
 0x122   : > { %5398 = shalt.err (!%p5395_p4)
}
 0x123   : > { %s5399_s7 = scalar_lea.vmem %s816_s11, 16  ;;  %s5406_s12 = scalar_lea.vmem %s816_s11, 32 }
 0x124   : > { %p5400_p5 = scmp.ne.s32.totalorder %s816_s11, %s5399_s7  ;;  %p5407_p10 = scmp.lt.s32.totalorder %s816_s11, %s816_s11 }
 0x125   : > { %p5408_p7 = scmp.lt.s32.totalorder %s5406_s12, %s5399_s7 }
 0x126   : > { %p5402_p6 = pnand %p5400_p5, %p6063_p0 }
 0x127   : > { %p5409_p8 = por %p5408_p7, %p5407_p10 }
 0x128   : > { %p5403_p9 = pneg %p5402_p6 }
 0x12a   : > { %p5410_p11 = pnand %p5409_p8, %p5403_p9 }
 0x12c   : > { %5413 = shalt.err (!%p5410_p11)
}
 0x12d   : > { %4908 = dma.hbm_to_vmem [thread:$0]  (!%p6051_p12), %s5877_s8, 16, %s816_s11, [#allocation3]  }
 0x12e   : > { %s5414_s10 = scalar_lea.hbm %s5897_s30, 16 }
 0x12f   : > { %p5415_p13 = scmp.ne.s32.totalorder %s5897_s30, %s5414_s10  ;;  %p5421_p3 = scmp.lt.u32.totalorder %s5414_s10, %s5897_s30 }
 0x131   : > { %p5417_p1 = pnand %p5415_p13, %p6063_p0 }
 0x133   : > { %p5418_p2 = pneg %p5417_p1 }
 0x135   : > { %p5423_p4 = pnand %p5421_p3, %p5418_p2 }
 0x137   : > { %5426 = shalt.err (!%p5423_p4)
}
 0x138   : > { %s5427_s19 = scalar_lea.vmem %s844_s16, 16  ;;  %s5434_s2 = scalar_lea.vmem %s844_s16, 32 }
 0x139   : > { %p5428_p5 = scmp.ne.s32.totalorder %s844_s16, %s5427_s19  ;;  %p5435_p10 = scmp.lt.s32.totalorder %s844_s16, %s844_s16 }
 0x13a   : > { %p5436_p7 = scmp.lt.s32.totalorder %s5434_s2, %s5427_s19 }
 0x13b   : > { %p5430_p6 = pnand %p5428_p5, %p6063_p0 }
 0x13c   : > { %p5437_p8 = por %p5436_p7, %p5435_p10 }
 0x13d   : > { %p5431_p9 = pneg %p5430_p6 }
 0x13f   : > { %p5438_p11 = pnand %p5437_p8, %p5431_p9 }
 0x141   : > { %5441 = shalt.err (!%p5438_p11)
}
 0x142   : > { %4914 = dma.hbm_to_vmem [thread:$0]  (!%p6051_p12), %s5897_s30, 16, %s844_s16, [#allocation6]  }
 0x143   : > { %s5812_s11 = smov [#allocation10]   ;;  %s5442_s7 = scalar_lea.hbm %s5912_s20, 512 }
 0x144   : > { %s867_s22 = sshll.u32 %s5812_s11, 4  ;;  %p5443_p13 = scmp.ne.s32.totalorder %s5912_s20, %s5442_s7  ;;  %s868_s22 = int_to_ptr.vmem [resolvable:$true] %s867_s22 }
 0x145   : > { %p5449_p3 = scmp.lt.u32.totalorder %s5442_s7, %s5912_s20 }
 0x146   : > { %p5445_p1 = pnand %p5443_p13, %p6063_p0 }
 0x148   : > { %p5446_p2 = pneg %p5445_p1 }
 0x14a   : > { %p5451_p4 = pnand %p5449_p3, %p5446_p2 }
 0x14c   : > { %5454 = shalt.err (!%p5451_p4)
}
 0x14d   : > { %s5455_s12 = scalar_lea.vmem %s868_s22, 512  ;;  %p5463_p10 = scmp.lt.s32.totalorder %s868_s22, %s868_s22 }
 0x14e   : > { %p5456_p5 = scmp.ne.s32.totalorder %s868_s22, %s5455_s12  ;;  %p5464_p7 = scmp.lt.s32.totalorder %s5455_s12, %s5455_s12 }
 0x150   : > { %p5458_p6 = pnand %p5456_p5, %p6063_p0  ;;  %p5465_p8 = por %p5464_p7, %p5463_p10 }
 0x152   : > { %p5459_p9 = pneg %p5458_p6 }
 0x154   : > { %p5466_p11 = pnand %p5465_p8, %p5459_p9 }
 0x156   : > { %5469 = shalt.err (!%p5466_p11)
}
 0x157   : > { %s6693_s16 = smov 128   ;;  %s6694_s10 = smov 8  }
 0x158   : > { %4920 = dma.hbm_to_vmem [thread:$0]  (!%p6051_p12), %s5912_s20, 512, %s868_s22, [#allocation9], %s6693_s16, %s6693_s16, %s6694_s10  }
 0x159   : > { %s5815_s19 = smov [#allocation13]   ;;  %s5816_s11 = smov [#allocation16]  }
 0x15a   : > { %s891_s2 = sshll.u32 %s5815_s19, 4  ;;  %s915_s7 = sshll.u32 %s5816_s11, 4  ;;  %s892_s2 = int_to_ptr.vmem [resolvable:$true] %s891_s2  ;;  %s6200_s7 = int_to_ptr.vmem [resolvable:$true] %s915_s7 }
 0x15b   : > { %s5470_s12 = scalar_lea.hbm %s6720_s4, 512 }
 0x15c   : > { %p5471_p13 = scmp.ne.s32.totalorder %s6720_s4, %s5470_s12  ;;  %p5477_p3 = scmp.lt.u32.totalorder %s5470_s12, %s6720_s4 }
 0x15e   : > { %p5473_p1 = pnand %p5471_p13, %p6063_p0 }
 0x160   : > { %p5474_p2 = pneg %p5473_p1 }
 0x162   : > { %p5479_p4 = pnand %p5477_p3, %p5474_p2 }
 0x164   : > { %5482 = shalt.err (!%p5479_p4)
}
 0x165   : > { %s5483_s3 = scalar_lea.vmem %s892_s2, 512  ;;  %p5491_p10 = scmp.lt.s32.totalorder %s892_s2, %s892_s2 }
 0x166   : > { %p5484_p5 = scmp.ne.s32.totalorder %s892_s2, %s5483_s3  ;;  %p5492_p7 = scmp.lt.s32.totalorder %s5483_s3, %s5483_s3 }
 0x168   : > { %p5486_p6 = pnand %p5484_p5, %p6063_p0  ;;  %p5493_p8 = por %p5492_p7, %p5491_p10 }
 0x16a   : > { %p5487_p9 = pneg %p5486_p6 }
 0x16c   : > { %p5494_p11 = pnand %p5493_p8, %p5487_p9 }
 0x16e   : > { %5497 = shalt.err (!%p5494_p11)
}
 0x16f   : > { %4926 = dma.hbm_to_vmem [thread:$0]  (!%p6051_p12), %s6720_s4, 512, %s892_s2, [#allocation12], %s6693_s16, %s6693_s16, %s6694_s10  }
 0x170   : > { %s5498_s22 = scalar_lea.hbm %s5932_s13, 512 }
 0x171   : > { %p5499_p13 = scmp.ne.s32.totalorder %s5932_s13, %s5498_s22  ;;  %p5505_p3 = scmp.lt.u32.totalorder %s5498_s22, %s5932_s13 }
 0x173   : > { %p5501_p1 = pnand %p5499_p13, %p6063_p0 }
 0x175   : > { %p5502_p2 = pneg %p5501_p1 }
 0x177   : > { %p5507_p4 = pnand %p5505_p3, %p5502_p2 }
 0x179   : > { %5510 = shalt.err (!%p5507_p4)
}
 0x17a   : > { %s5511_s3 = scalar_lea.vmem %s6200_s7, 512  ;;  %p5519_p10 = scmp.lt.s32.totalorder %s6200_s7, %s6200_s7 }
 0x17b   : > { %p5512_p5 = scmp.ne.s32.totalorder %s6200_s7, %s5511_s3  ;;  %p5520_p7 = scmp.lt.s32.totalorder %s5511_s3, %s5511_s3 }
 0x17d   : > { %p5514_p6 = pnand %p5512_p5, %p6063_p0  ;;  %p5521_p8 = por %p5520_p7, %p5519_p10 }
 0x17f   : > { %p5515_p9 = pneg %p5514_p6 }
 0x181   : > { %p5522_p11 = pnand %p5521_p8, %p5515_p9 }
 0x183   : > { %5525 = shalt.err (!%p5522_p11)
}
 0x184   : > { %4932 = dma.hbm_to_vmem [thread:$0]  (!%p6051_p12), %s5932_s13, 512, %s6200_s7, [#allocation15], %s6693_s16, %s6693_s16, %s6694_s10  }
 0x185   : > { %s5817_s19 = smov [#allocation19]   ;;  %s5818_s11 = smov [#allocation22]  }
 0x186   : > { %s940_s2 = sshll.u32 %s5817_s19, 4  ;;  %s962_s12 = sshll.u32 %s5818_s11, 4  ;;  %s941_s2 = int_to_ptr.vmem [resolvable:$true] %s940_s2  ;;  %s6233_s12 = int_to_ptr.vmem [resolvable:$true] %s962_s12 }
 0x187   : > { %s5526_s22 = scalar_lea.hbm %s5942_s6, 16 }
 0x188   : > { %p5527_p13 = scmp.ne.s32.totalorder %s5942_s6, %s5526_s22  ;;  %p5533_p3 = scmp.lt.u32.totalorder %s5526_s22, %s5942_s6 }
 0x18a   : > { %p5529_p1 = pnand %p5527_p13, %p6063_p0 }
 0x18c   : > { %p5530_p2 = pneg %p5529_p1 }
 0x18e   : > { %p5535_p4 = pnand %p5533_p3, %p5530_p2 }
 0x190   : > { %5538 = shalt.err (!%p5535_p4)
}
 0x191   : > { %s5539_s3 = scalar_lea.vmem %s941_s2, 16  ;;  %s5546_s7 = scalar_lea.vmem %s941_s2, 32 }
 0x192   : > { %p5540_p5 = scmp.ne.s32.totalorder %s941_s2, %s5539_s3  ;;  %p5547_p10 = scmp.lt.s32.totalorder %s941_s2, %s941_s2 }
 0x193   : > { %p5548_p7 = scmp.lt.s32.totalorder %s5546_s7, %s5539_s3 }
 0x194   : > { %p5542_p6 = pnand %p5540_p5, %p6063_p0 }
 0x195   : > { %p5549_p8 = por %p5548_p7, %p5547_p10 }
 0x196   : > { %p5543_p9 = pneg %p5542_p6 }
 0x198   : > { %p5550_p11 = pnand %p5549_p8, %p5543_p9 }
 0x19a   : > { %5553 = shalt.err (!%p5550_p11)
}
 0x19b   : > { %s6734_s19 = sld [smem:[#allocation58_spill]] }
 0x19c   : > { %4938 = dma.hbm_to_vmem [thread:$0]  (!%p6051_p12), %s5942_s6, 16, %s941_s2, [#allocation18]  }
 0x1a1   : > { %s5554_s11 = scalar_lea.hbm %s6734_s19, 16 }
 0x1a2   : > { %p5555_p13 = scmp.ne.s32.totalorder %s6734_s19, %s5554_s11  ;;  %p5561_p3 = scmp.lt.u32.totalorder %s5554_s11, %s6734_s19 }
 0x1a4   : > { %p5557_p1 = pnand %p5555_p13, %p6063_p0 }
 0x1a6   : > { %p5558_p2 = pneg %p5557_p1 }
 0x1a8   : > { %p5563_p4 = pnand %p5561_p3, %p5558_p2 }
 0x1aa   : > { %5566 = shalt.err (!%p5563_p4)
}
 0x1ab   : > { %s5567_s22 = scalar_lea.vmem %s6233_s12, 16  ;;  %s5574_s3 = scalar_lea.vmem %s6233_s12, 32 }
 0x1ac   : > { %p5568_p5 = scmp.ne.s32.totalorder %s6233_s12, %s5567_s22  ;;  %p5575_p10 = scmp.lt.s32.totalorder %s6233_s12, %s6233_s12 }
 0x1ad   : > { %p5576_p7 = scmp.lt.s32.totalorder %s5574_s3, %s5567_s22 }
 0x1ae   : > { %p5570_p6 = pnand %p5568_p5, %p6063_p0 }
 0x1af   : > { %p5577_p8 = por %p5576_p7, %p5575_p10 }
 0x1b0   : > { %p5571_p9 = pneg %p5570_p6 }
 0x1b2   : > { %p5578_p11 = pnand %p5577_p8, %p5571_p9 }
 0x1b4   : > { %5581 = shalt.err (!%p5578_p11)
}
 0x1b5   : > { %s6735_s2 = sld [smem:[#allocation59_spill]]  ;;  %s5819_s7 = smov [#allocation25]  }
 0x1b6   : > { %4944 = dma.hbm_to_vmem [thread:$0]  (!%p6051_p12), %s6734_s19, 16, %s6233_s12, [#allocation21]  }
 0x1b7   : > { %s984_s11 = sshll.u32 %s5819_s7, 4  ;;  %s5820_s16 = smov [#allocation28]   ;;  %s985_s11 = int_to_ptr.vmem [resolvable:$true] %s984_s11 }
 0x1b8   : > { %s1005_s10 = sshll.u32 %s5820_s16, 4  ;;  %s6261_s10 = int_to_ptr.vmem [resolvable:$true] %s1005_s10 }
 0x1bb   : > { %s5582_s22 = scalar_lea.hbm %s6735_s2, 16 }
 0x1bc   : > { %p5583_p13 = scmp.ne.s32.totalorder %s6735_s2, %s5582_s22  ;;  %p5589_p3 = scmp.lt.u32.totalorder %s5582_s22, %s6735_s2 }
 0x1be   : > { %p5585_p1 = pnand %p5583_p13, %p6063_p0 }
 0x1c0   : > { %p5586_p2 = pneg %p5585_p1 }
 0x1c2   : > { %p5591_p4 = pnand %p5589_p3, %p5586_p2 }
 0x1c4   : > { %5594 = shalt.err (!%p5591_p4)
}
 0x1c5   : > { %s5595_s3 = scalar_lea.vmem %s985_s11, 16  ;;  %s5602_s12 = scalar_lea.vmem %s985_s11, 32 }
 0x1c6   : > { %p5596_p5 = scmp.ne.s32.totalorder %s985_s11, %s5595_s3  ;;  %p5603_p10 = scmp.lt.s32.totalorder %s985_s11, %s985_s11 }
 0x1c7   : > { %p5604_p7 = scmp.lt.s32.totalorder %s5602_s12, %s5595_s3 }
 0x1c8   : > { %p5598_p6 = pnand %p5596_p5, %p6063_p0 }
 0x1c9   : > { %p5605_p8 = por %p5604_p7, %p5603_p10 }
 0x1ca   : > { %p5599_p9 = pneg %p5598_p6 }
 0x1cc   : > { %p5606_p11 = pnand %p5605_p8, %p5599_p9 }
 0x1ce   : > { %5609 = shalt.err (!%p5606_p11)
}
 0x1cf   : > { %s6736_s16 = sld [smem:[#allocation61_spill]] }
 0x1d0   : > { %4950 = dma.hbm_to_vmem [thread:$0]  (!%p6051_p12), %s6735_s2, 16, %s985_s11, [#allocation24]  }
 0x1d5   : > { %s5610_s7 = scalar_lea.hbm %s6736_s16, 512 }
 0x1d6   : > { %p5611_p13 = scmp.ne.s32.totalorder %s6736_s16, %s5610_s7  ;;  %p5617_p3 = scmp.lt.u32.totalorder %s5610_s7, %s6736_s16 }
 0x1d8   : > { %p5613_p1 = pnand %p5611_p13, %p6063_p0 }
 0x1da   : > { %p5614_p2 = pneg %p5613_p1 }
 0x1dc   : > { %p5619_p4 = pnand %p5617_p3, %p5614_p2 }
 0x1de   : > { %5622 = shalt.err (!%p5619_p4)
}
 0x1df   : > { %s5623_s22 = scalar_lea.vmem %s6261_s10, 512  ;;  %p5631_p10 = scmp.lt.s32.totalorder %s6261_s10, %s6261_s10 }
 0x1e0   : > { %p5624_p5 = scmp.ne.s32.totalorder %s6261_s10, %s5623_s22  ;;  %p5632_p7 = scmp.lt.s32.totalorder %s5623_s22, %s5623_s22 }
 0x1e2   : > { %p5626_p6 = pnand %p5624_p5, %p6063_p0  ;;  %p5633_p8 = por %p5632_p7, %p5631_p10 }
 0x1e4   : > { %p5627_p9 = pneg %p5626_p6 }
 0x1e6   : > { %p5634_p11 = pnand %p5633_p8, %p5627_p9 }
 0x1e8   : > { %5637 = shalt.err (!%p5634_p11)
}
 0x1e9   : > { %s6737_s11 = smov 8   ;;  %s6738_s3 = smov 128  }
 0x1ea   : > { %4956 = dma.hbm_to_vmem [thread:$0]  (!%p6051_p12), %s6736_s16, 512, %s6261_s10, [#allocation27], %s6738_s3, %s6738_s3, %s6737_s11  }
 0x1eb   : > { %s5821_s12 = smov [#allocation31]   ;;  %s5638_s2 = scalar_lea.hbm %s5987_s21, 16 }
 0x1ec   : > { %s1033_s7 = sshll.u32 %s5821_s12, 4  ;;  %p5639_p13 = scmp.ne.s32.totalorder %s5987_s21, %s5638_s2  ;;  %s1034_s7 = int_to_ptr.vmem [resolvable:$true] %s1033_s7 }
 0x1ed   : > { %p5645_p3 = scmp.lt.u32.totalorder %s5638_s2, %s5987_s21 }
 0x1ee   : > { %p5641_p1 = pnand %p5639_p13, %p6063_p0 }
 0x1f0   : > { %p5642_p2 = pneg %p5641_p1 }
 0x1f2   : > { %p5647_p4 = pnand %p5645_p3, %p5642_p2 }
 0x1f4   : > { %5650 = shalt.err (!%p5647_p4)
}
 0x1f5   : > { %s5651_s22 = scalar_lea.vmem %s1034_s7, 16  ;;  %s5658_s4 = scalar_lea.vmem %s1034_s7, 32 }
 0x1f6   : > { %p5652_p5 = scmp.ne.s32.totalorder %s1034_s7, %s5651_s22  ;;  %p5659_p10 = scmp.lt.s32.totalorder %s1034_s7, %s1034_s7 }
 0x1f7   : > { %p5660_p7 = scmp.lt.s32.totalorder %s5658_s4, %s5651_s22 }
 0x1f8   : > { %p5654_p6 = pnand %p5652_p5, %p6063_p0 }
 0x1f9   : > { %p5661_p8 = por %p5660_p7, %p5659_p10 }
 0x1fa   : > { %p5655_p9 = pneg %p5654_p6 }
 0x1fc   : > { %p5662_p11 = pnand %p5661_p8, %p5655_p9 }
 0x1fe   : > { %5665 = shalt.err (!%p5662_p11)
}
 0x1ff   : > { %4962 = dma.hbm_to_vmem [thread:$0]  (!%p6051_p12), %s5987_s21, 16, %s1034_s7, [#allocation30]  }
 0x200   : > { %p6739_p13 = scmp.ne.s32.totalorder %s6731_s18, 0 }
 0x201   : > { %p6740_p1 = scmp.eq.s32.totalorder (!%p6739_p13), %s6015_s28, 0 }
 0x202   : > { %1081 = sbr.rel (%p6739_p13) target bundleno = 6172 (0x181c), region = 144 }
 0x209   : > { %5711 = dma.done.wait (%p6740_p1), [#allocation3], 16   ;;  %p6741_p2 = pmov %p6740_p1 }
 0x20a   : > { %p6742_p0 = pmov %p6740_p1 }
 0x20b   : > { %5713 = vsyncadd (%p6741_p2), [#allocation3], 4294967280 }
 0x20c   : > { %5715 = dma.done.wait (%p6742_p0), [#allocation6], 32   ;;  %p6743_p3 = pmov %p6742_p0 }
 0x20d   : > { %p6744_p4 = pmov %p6742_p0 }
 0x20e   : > { %5717 = vsyncadd (%p6743_p3), [#allocation6], 4294967264 }
 0x20f   : > { %5719 = dma.done.wait (%p6744_p4), [#allocation9], 528   ;;  %p6745_p12 = pmov %p6742_p0 }
 0x210   : > { %p6746_p5 = pmov %p6742_p0 }
 0x211   : > { %5721 = vsyncadd (%p6745_p12), [#allocation9], 4294966768 }
 0x212   : > { %5723 = dma.done.wait (%p6746_p5), [#allocation12], 528   ;;  %p6747_p6 = pmov %p6742_p0 }
 0x213   : > { %p6748_p9 = pmov %p6742_p0 }
 0x214   : > { %5725 = vsyncadd (%p6747_p6), [#allocation12], 4294966768 }
 0x215   : > { %5727 = dma.done.wait (%p6748_p9), [#allocation15], 528   ;;  %p6749_p10 = pmov %p6742_p0 }
 0x216   : > { %p6750_p7 = pmov %p6742_p0 }
 0x217   : > { %5729 = vsyncadd (%p6749_p10), [#allocation15], 4294966768 }
 0x218   : > { %5731 = dma.done.wait (%p6750_p7), [#allocation18], 32   ;;  %p6751_p8 = pmov %p6742_p0 }
 0x219   : > { %p6752_p11 = pmov %p6742_p0 }
 0x21a   : > { %5733 = vsyncadd (%p6751_p8), [#allocation18], 4294967264 }
 0x21b   : > { %5735 = dma.done.wait (%p6752_p11), [#allocation21], 32   ;;  %p6753_p13 = pmov %p6742_p0 }
 0x21c   : > { %p6754_p1 = pmov %p6742_p0 }
 0x21d   : > { %5737 = vsyncadd (%p6753_p13), [#allocation21], 4294967264 }
 0x21e   : > { %5739 = dma.done.wait (%p6754_p1), [#allocation24], 32   ;;  %p6755_p2 = pmov %p6742_p0 }
 0x220   : > { %5741 = vsyncadd (%p6755_p2), [#allocation24], 4294967264 }
 0x221   : > { %5743 = dma.done.wait (%p6742_p0), [#allocation27], 528   ;;  %p6756_p3 = pmov %p6742_p0 }
 0x222   : > { %p6757_p4 = pmov %p6742_p0 }
 0x223   : > { %5745 = vsyncadd (%p6756_p3), [#allocation27], 4294966768 }
 0x224   : > { %5747 = dma.done.wait (%p6757_p4), [#allocation30], 32   ;;  %p6758_p12 = pmov %p6742_p0 }
 0x225   : > { %s6759_s4 = sld [smem:[#allocation49_spill]]  ;;  %p1248_p5 = scmp.lt.s32.totalorder %s6015_s28, 1  ;;  %v5822_v0 = vmov 0.0|0.0   ;;  %vm5823_vm0 = vmmov 0   ;;  %v5824_v1 = vmov 0.0   ;;  %vm1303_vm1 = vcmask 261120  }
 0x226   : > { %5749 = vsyncadd (%p6758_p12), [#allocation30], 4294967264  ;;  %4761 = vmatprep.subr.bf16.mxu0 %v5822_v0  ;;  %s6760_s26 = sld [smem:[#allocation44_spill]]  ;;  %s6761_s18 = sld [smem:[#allocation51_spill]]  ;;  %4537 = vmatprep.mubr.msk.f32.mxu0 %vm5823_vm0, %v5824_v1  ;;  %v4372_v23 = vld [vmem:[#allocation2] ss:$0 sm:$0xff] }
 0x227   : > { %4567 = vmatprep.subr.mxu1 %v5824_v1  ;;  %4569 = vmatprep.mubr.msk.f32.mxu1 %vm5823_vm0, %v5824_v1  ;;  %s1249_s1 = scalar_select %p1248_p5, %s6015_s28, 1  ;;  %vm1529_vm2 = vcmask 64512   ;;  %v4374_v29 = vld [vmem:[#allocation5] ss:$0 sm:$0xff] }
 0x228   : > { %s6762_s2 = sld [smem:[#allocation52_spill]]  ;;  %s6763_s3 = sld [smem:[#allocation50_spill]] }
 0x229   : > { %s6355_s10 = sshll.u32 %s1249_s1, 3  ;;  %s5825_s12 = smov 120  }
 0x22a   : > { %s6764_s7 = sld [smem:[#allocation48_spill]]  ;;  %s5826_s22 = smov 112  }
 0x22b   : > { %v1277_v2 = vld [vmem:[%s6759_s4] sm:$0xff]  ;;  %v1278_v3 = vld [vmem:[%s6759_s4 + $0x8] sm:$0xff]  ;;  %v1279_v4 = vld [vmem:[%s6759_s4 + $0x10] sm:$0xff]  ;;  %s6765_s1 = sld [smem:[#allocation54_spill]]  ;;  %p6771_p9 = scmp.ne.s32.totalorder %s6728_s15, 0 }
 0x22c   : > { %v4762_v5 = vpack.c.bf16 %v1278_v3, %v1277_v2  ;;  %v1280_v6 = vld [vmem:[%s6759_s4 + $0x18] sm:$0xff]  ;;  %s1251_s11 = scalar_lea.vmem %s6760_s26, %s6355_s10  ;;  %v1282_v8 = vld [vmem:[%s6761_s18] sm:$0xff]  ;;  %v1283_v9 = vld [vmem:[%s6761_s18 + $0x8] sm:$0xff] }
 0x22d   : > { %v4765_v7 = vpack.c.bf16 %v1280_v6, %v1279_v4  ;;  %v6362_v10 = vld [vmem:[%s1251_s11] sm:$0xff]  ;;  %v4768_v11 = vpack.c.bf16 %v1283_v9, %v1282_v8  ;;  %v1284_v12 = vld [vmem:[%s6761_s18 + $0x10] sm:$0xff]  ;;  %v1285_v13 = vld [vmem:[%s6761_s18 + $0x18] sm:$0xff]  ;;  %s6697_s11 = smov 104  }
 0x22e   : > { %4763 = vmatpush3.bf16.msra.mxu0 %v4762_v5  ;;  %v4771_v14 = vpack.c.bf16 %v1285_v13, %v1284_v12  ;;  %v1287_v15 = vld [vmem:[%s6762_s2] sm:$0xff]  ;;  %v1288_v16 = vld [vmem:[%s6762_s2 + $0x8] sm:$0xff]  ;;  %v1289_v18 = vld [vmem:[%s6762_s2 + $0x10] sm:$0xff] }
 0x22f   : > { %4764 = vmatprep.subr.bf16.mxu0 %v5822_v0  ;;  %v4774_v17 = vpack.c.bf16 %v1288_v16, %v1287_v15  ;;  %v1290_v19 = vld [vmem:[%s6762_s2 + $0x18] sm:$0xff]  ;;  %v4370_v25 = vld [vmem:[%s6763_s3] ss:$0 sm:$0xff]  ;;  %s6766_s3 = sld [smem:[#allocation55_spill]] }
 0x230   : > { %v4777_v20 = vpack.c.bf16 %v1290_v19, %v1289_v18  ;;  %s1267_s26 = scalar_lea.vmem %s6764_s7, %s6355_s10  ;;  %s6767_s7 = sld [smem:[#allocation45_spill]] }
 0x231   : > { %v1271_v35 = vld [vmem:[%s1267_s26] sm:$0xff]  ;;  %v1293_v59 = vld [vmem:[%s6765_s1 + $0x8] sm:$0xff] }
 0x232   : > { %4766 = vmatpush3.bf16.msra.mxu0 %v4765_v7  ;;  %vm1272_vm3 = vcmp.eq.f32.partialorder %v1271_v35, 0.0  ;;  %v1292_v56 = vld [vmem:[%s6765_s1] sm:$0xff] }
 0x233   : > { %4767 = vmatprep.subr.bf16.mxu0 %v5822_v0  ;;  %v6415_v37 = vsel %vm1272_vm3, -1e+09, %v5824_v1 }
 0x235   : > { %4538 = vmatmul.mubr.msk.f32.vlgmr.msra.gmra.mrb[0].mxu0 %vm1303_vm1, %v6362_v10 }
 0x236   : > { %4769 = vmatpush3.bf16.msra.mxu0 %v4768_v11  ;;  %4548 = vmatprep.mubr.msk.f32.mxu0 %vm5823_vm0, %v5824_v1  ;;  %s1255_s26 = scalar_lea.vmem %s6767_s7, %s6355_s10  ;;  %s6768_s7 = sld [smem:[#allocation46_spill]] }
 0x237   : > { %4770 = vmatprep.subr.bf16.mxu0 %v5822_v0 }
 0x23a   : > { %4772 = vmatpush3.bf16.msra.mxu0 %v4771_v14 }
 0x23b   : > { %4773 = vmatprep.subr.bf16.mxu0 %v5822_v0 }
 0x23d   : > { %4549 = vmatmul.mubr.msk.f32.vlgmr.msra.gmra.mrb[2].mxu0 %vm1303_vm1, %v6362_v10 }
 0x23e   : > { %4775 = vmatpush3.bf16.msra.mxu0 %v4774_v17  ;;  %4559 = vmatprep.mubr.msk.f32.mxu0 %vm5823_vm0, %v5824_v1 }
 0x23f   : > { %4776 = vmatprep.subr.bf16.mxu0 %v5822_v0 }
 0x242   : > { %4778 = vmatpush3.bf16.msra.mxu0 %v4777_v20 }
 0x243   : > { %4562 = vmatprep.subr.mxu0 %v5824_v1 }
 0x245   : > { %4560 = vmatmul.mubr.msk.f32.vlgmr.msra.gmra.mrb[4].mxu0 %vm1303_vm1, %v6362_v10 }
 0x246   : > { %4564 = vmatprep.mubr.msk.f32.mxu0 %vm5823_vm0, %v5824_v1 }
 0x308   : > { %v1373_v21 = vpop.f32.mrb[0].mxu0 }
 0x309   : > { %v4539_v22 = vpop.f32.mrb[1].mxu0  ;;  %v1374_v28 = vadd.f32 %v4370_v25, %v1373_v21 }
 0x310   : > { %v1449_v24 = vpop.f32.mrb[2].mxu0 }
 0x311   : > { %v6388_v26 = vadd.f32 %v4372_v23, %v1449_v24  ;;  %v4550_v27 = vpop.f32.mrb[3].mxu0 }
 0x313   : > { %1694 = vrot.lane.b32.xlu0 %v6388_v26, %s5825_s12  ;;  %4563 = vmatpush3.xpose.msk.msra.mxu0 %vm1529_vm2, %v6388_v26 }
 0x314   : > { %4572 = vmatprep.subr.mxu0 %v5824_v1 }
 0x316   : > { %4565 = vmatmul.mubr.msk.f32.vlgmr.msra.gmra.mrb[6].mxu0 %vm1529_vm2, %v1374_v28 }
 0x317   : > { %1692 = vrot.lane.b32.xlu0 %v1374_v28, %s5825_s12  ;;  %4574 = vmatprep.mubr.msk.f32.mxu0 %vm5823_vm0, %v5824_v1 }
 0x318   : > { %v1525_v30 = vpop.f32.mrb[4].mxu0 }
 0x319   : > { %v6399_v31 = vadd.f32 %v4374_v29, %v1525_v30  ;;  %v4561_v32 = vpop.f32.mrb[5].mxu0  ;;  %v1294_v29 = vld [vmem:[%s6765_s1 + $0x10] sm:$0xff] }
 0x31b   : > { %1783 = vrot.lane.b32.xlu0 %v6399_v31, %s5825_s12  ;;  %4568 = vmatpush3.msra.mxu1 %v6399_v31 }
 0x31c   : > { %4577 = vmatprep.subr.mxu1 %v5824_v1 }
 0x31f   : > { %2008 = vrot.lane.b32.xlu0 %v6388_v26, %s5826_s22 }
 0x385   : > { %v1695_v33 = vpop.permute.xlu0 %1694 }
 0x386   : > { %4573 = vmatpush3.xpose.msk.msra.mxu0 %vm1529_vm2, %v1695_v33 }
 0x387   : > { %4582 = vmatprep.subr.mxu0 %v5824_v1 }
 0x389   : > { %v1693_v34 = vpop.permute.xlu0 %1692 }
 0x38a   : > { %4575 = vmatmul.mubr.msk.f32.vlgmr.msra.gmra.mrb[8].mxu0 %vm1529_vm2, %v1693_v34 }
 0x38b   : > { %4584 = vmatprep.mubr.msk.f32.mxu0 %vm5823_vm0, %v5824_v1  ;;  %4583 = vmatpush3.msra.mxu0 %v1293_v59 }
 0x38c   : > { %4592 = vmatprep.subr.mxu0 %v5824_v1 }
 0x38d   : > { %v1784_v51 = vpop.permute.xlu0 %1783 }
 0x391   : > { %v2009_v60 = vpop.permute.xlu0 %2008 }
 0x3e9   : > { %v1602_v36 = vpop.f32.mrb[6].mxu0 }
 0x3ea   : > { %v1606_v38 = vmul.f32 0.35355338, %v1602_v36  ;;  %v4566_v39 = vpop.f32.mrb[7].mxu0 }
 0x3ec   : > { %v1607_v40 = vadd.f32 %v1606_v38, %v6415_v37 }
 0x3ee   : > { %v1608_v41 = vsel %vm1529_vm2, %v1607_v40, -inf }
 0x3ef   : > { %1609 = vmax.xlane.f32.xlu1 %v1608_v41 }
 0x45d   : > { %v1766_v42 = vpop.f32.mrb[8].mxu0 }
 0x45e   : > { %v1770_v43 = vmul.f32 0.35355338, %v1766_v42  ;;  %v4576_v44 = vpop.f32.mrb[9].mxu0 }
 0x460   : > { %v1771_v45 = vadd.f32 %v1770_v43, %v6415_v37 }
 0x462   : > { %v1772_v46 = vsel %vm1529_vm2, %v1771_v45, -inf }
 0x463   : > { %1773 = vmax.xlane.f32.xlu1 %v1772_v46 }
 0x47c   : > { %v1610_v47 = vpop.xlane.xlu1 %1609 }
 0x47d   : > { %v1611_v48 = vsub.f32 %v1607_v40, %v1610_v47  ;;  %v1295_v47 = vld [vmem:[%s6765_s1 + $0x18] sm:$0xff] }
 0x47f   : > { %v1612_v49 = vmul.f32 1.442695, %v1611_v48 }
 0x481   : > { %5096 = vpow2.f32 %v1612_v49 }
 0x48b   : > { %v5097_v50 = vpop.eup %5096 }
 0x48c   : > { %4570 = vmatmul.mubr.msk.f32.vlgmr.msra.gmra.mrb[0].mxu1 %vm1529_vm2, %v5097_v50  ;;  %v1614_v52 = vsel %vm1529_vm2, %v5097_v50, 0.0 }
 0x48d   : > { %1615 = vadd.xlane.f32.xlu0 %v1614_v52  ;;  %4578 = vmatpush3.msra.mxu1 %v1784_v51 }
 0x48e   : > { %4579 = vmatprep.mubr.msk.f32.mxu1 %vm5823_vm0, %v5824_v1  ;;  %4587 = vmatprep.subr.mxu1 %v5824_v1 }
 0x4a3   : > { %2096 = vrot.lane.b32.xlu0 %v6399_v31, %s5826_s22 }
 0x4a7   : > { %2247 = vrot.lane.b32.xlu0 %v1374_v28, %s6697_s11 }
 0x4f0   : > { %v1774_v53 = vpop.xlane.xlu1 %1773 }
 0x4f1   : > { %v1775_v54 = vsub.f32 %v1771_v45, %v1774_v53 }
 0x4f3   : > { %v1776_v55 = vmul.f32 1.442695, %v1775_v54 }
 0x4f5   : > { %5098 = vpow2.f32 %v1776_v55  ;;  %v4392_v55 = vld [vmem:[#allocation7] ss:$0 sm:$0xff] }
 0x4ff   : > { %v5099_v57 = vpop.eup %5098 }
 0x500   : > { %4580 = vmatmul.mubr.msk.f32.vlgmr.msra.gmra.mrb[2].mxu1 %vm1529_vm2, %v5099_v57  ;;  %v1778_v58 = vsel %vm1529_vm2, %v5099_v57, 0.0 }
 0x501   : > { %1779 = vadd.xlane.f32.xlu1 %v1778_v58  ;;  %4588 = vmatpush3.msra.mxu1 %v1292_v56 }
 0x502   : > { %4589 = vmatprep.mubr.msk.f32.mxu1 %vm5823_vm0, %v5824_v1  ;;  %4597 = vmatprep.subr.mxu1 %v5824_v1 }
 0x512   : > { %2006 = vrot.lane.b32.xlu1 %v1374_v28, %s5826_s22 }
 0x51a   : > { %v1616_v61 = vpop.xlane.xlu0 %1615 }
 0x51b   : > { %5100 = vrcp.f32 %v1616_v61 }
 0x51e   : > { %v2097_v4 = vpop.permute.xlu0 %2096 }
 0x525   : > { %v5101_v62 = vpop.eup %5100 }
 0x55f   : > { %v1687_v63 = vpop.f32.mrb[0].mxu1 }
 0x560   : > { %v1691_v2 = vmul.f32 %v5101_v62, %v1687_v63  ;;  %v4571_v3 = vpop.f32.mrb[1].mxu1 }
 0x562   : > { %4590 = vmatmul.mubr.msk.f32.vlgmr.msra.gmra.mrb[4].mxu1 %vm1529_vm2, %v1691_v2 }
 0x563   : > { %4598 = vmatpush3.msra.mxu1 %v2097_v4  ;;  %4599 = vmatprep.mubr.msk.f32.mxu1 %vm5823_vm0, %v5824_v1 }
 0x564   : > { %4607 = vmatprep.subr.mxu1 %v5824_v1 }
 0x58e   : > { %v1780_v5 = vpop.xlane.xlu1 %1779 }
 0x58f   : > { %5102 = vrcp.f32 %v1780_v5  ;;  %v2531_v5 = vld [vmem:[#allocation10] sm:$0xff] }
 0x592   : > { %v2007_v11 = vpop.permute.xlu1 %2006 }
 0x599   : > { %v5103_v6 = vpop.eup %5102 }
 0x5d3   : > { %v1855_v7 = vpop.f32.mrb[2].mxu1 }
 0x5d4   : > { %v1859_v8 = vmul.f32 %v5103_v6, %v1855_v7  ;;  %v4581_v9 = vpop.f32.mrb[3].mxu1  ;;  %v2532_v6 = vld [vmem:[#allocation10 + $0x8] sm:$0xff] }
 0x5d5   : > { %v4786_v7 = vpack.c.bf16 %v2532_v6, %v2531_v5 }
 0x5d6   : > { %4585 = vmatmul.mubr.msk.f32.vlgmr.msra.gmra.mrb[10].mxu0 %vm1529_vm2, %v1859_v8  ;;  %v2534_v8 = vld [vmem:[#allocation10 + $0x18] sm:$0xff] }
 0x5d7   : > { %4593 = vmatpush3.xpose.msk.msra.mxu0 %vm1529_vm2, %v2009_v60  ;;  %4594 = vmatprep.mubr.msk.f32.mxu0 %vm5823_vm0, %v5824_v1 }
 0x5d8   : > { %4602 = vmatprep.subr.mxu0 %v5824_v1 }
 0x5da   : > { %4595 = vmatmul.mubr.msk.f32.vlgmr.msra.gmra.mrb[12].mxu0 %vm1529_vm2, %v2007_v11  ;;  %v2526_v11 = vld [vmem:[%s6766_s3] sm:$0xff] }
 0x5db   : > { %4604 = vmatprep.mubr.msk.f32.mxu0 %vm5823_vm0, %v5824_v1  ;;  %4603 = vmatpush3.msra.mxu0 %v1294_v29 }
 0x5dc   : > { %4612 = vmatprep.subr.mxu0 %v5824_v1 }
 0x635   : > { %v2002_v12 = vpop.f32.mrb[4].mxu1 }
 0x636   : > { %v4591_v13 = vpop.f32.mrb[5].mxu1 }
 0x6a9   : > { %v1929_v14 = vpop.f32.mrb[10].mxu0 }
 0x6aa   : > { %v2003_v15 = vadd.f32 %v2002_v12, %v1929_v14  ;;  %v4586_v16 = vpop.f32.mrb[11].mxu0  ;;  %v2527_v12 = vld [vmem:[%s6766_s3 + $0x8] sm:$0xff]  ;;  %v2528_v14 = vld [vmem:[%s6766_s3 + $0x10] sm:$0xff] }
 0x6ab   : > { %v4780_v13 = vpack.c.bf16 %v2527_v12, %v2526_v11  ;;  %v1269_v16 = vld [vmem:[%s1255_s26] sm:$0xff]  ;;  %s1259_s26 = scalar_lea.vmem %s6768_s7, %s6355_s10 }
 0x6ad   : > { %v2080_v17 = vpop.f32.mrb[12].mxu0 }
 0x6ae   : > { %v2084_v18 = vmul.f32 0.35355338, %v2080_v17  ;;  %v4596_v19 = vpop.f32.mrb[13].mxu0 }
 0x6b0   : > { %v2085_v20 = vadd.f32 %v2084_v18, %v6415_v37 }
 0x6b2   : > { %v2086_v21 = vsel %vm1529_vm2, %v2085_v20, -inf }
 0x6b3   : > { %2087 = vmax.xlane.f32.xlu1 %v2086_v21 }
 0x6c4   : > { %2249 = vrot.lane.b32.xlu1 %v6388_v26, %s6697_s11  ;;  %v2248_v26 = vpop.permute.xlu0 %2247 }
 0x740   : > { %v2088_v22 = vpop.xlane.xlu1 %2087 }
 0x741   : > { %v2089_v23 = vsub.f32 %v2085_v20, %v2088_v22  ;;  %v4393_v22 = vld [vmem:[#allocation19] ss:$0 sm:$0xff] }
 0x743   : > { %v2090_v24 = vmul.f32 1.442695, %v2089_v23 }
 0x744   : > { %v2250_v27 = vpop.permute.xlu1 %2249 }
 0x745   : > { %5104 = vpow2.f32 %v2090_v24  ;;  %v4394_v24 = vld [vmem:[#allocation20] ss:$0 sm:$0xff] }
 0x74f   : > { %v5105_v25 = vpop.eup %5104 }
 0x750   : > { %4600 = vmatmul.mubr.msk.f32.vlgmr.msra.gmra.mrb[6].mxu1 %vm1529_vm2, %v5105_v25  ;;  %v2092_v28 = vsel %vm1529_vm2, %v5105_v25, 0.0 }
 0x751   : > { %4608 = vmatpush3.xpose.msk.msra.mxu1 %vm1529_vm2, %v2250_v27  ;;  %2093 = vadd.xlane.f32.xlu0 %v2092_v28  ;;  %v4397_v28 = vld [vmem:[#allocation11] ss:$0 sm:$0xff] }
 0x752   : > { %4609 = vmatprep.mubr.msk.f32.mxu1 %vm5823_vm0, %v5824_v1  ;;  %4617 = vmatprep.subr.mxu1 %v5824_v1 }
 0x754   : > { %4610 = vmatmul.mubr.msk.f32.vlgmr.msra.gmra.mrb[8].mxu1 %vm1529_vm2, %v2248_v26 }
 0x755   : > { %4619 = vmatprep.mubr.msk.f32.mxu1 %vm5823_vm0, %v5824_v1  ;;  %4618 = vmatpush3.msra.mxu1 %v1295_v47 }
 0x756   : > { %4785 = vmatprep.subr.bf16.mxu1 %v5822_v0 }
 0x767   : > { %2337 = vrot.lane.b32.xlu0 %v6399_v31, %s6697_s11  ;;  %s6769_s11 = sld [smem:[#allocation47_spill]] }
 0x76d   : > { %s1263_s7 = scalar_lea.vmem %s6769_s11, %s6355_s10  ;;  %s6770_s10 = smov 104  }
 0x76e   : > { %s4426_s11 = sshll.u32 %s6015_s28, 7  ;;  %s5828_s28 = smov [#allocation32]  }
 0x7de   : > { %v2094_v30 = vpop.xlane.xlu0 %2093 }
 0x7df   : > { %5106 = vrcp.f32 %v2094_v30 }
 0x7e2   : > { %v2338_v36 = vpop.permute.xlu0 %2337 }
 0x7e9   : > { %v5107_v32 = vpop.eup %5106 }
 0x823   : > { %v2168_v33 = vpop.f32.mrb[6].mxu1 }
 0x824   : > { %v2172_v34 = vmul.f32 %v5107_v32, %v2168_v33  ;;  %v4601_v35 = vpop.f32.mrb[7].mxu1  ;;  %v2536_v32 = vld [vmem:[#allocation13] sm:$0xff]  ;;  %v2537_v33 = vld [vmem:[#allocation13 + $0x8] sm:$0xff] }
 0x825   : > { %v4792_v35 = vpack.c.bf16 %v2537_v33, %v2536_v32 }
 0x826   : > { %4605 = vmatmul.mubr.msk.f32.vlgmr.msra.gmra.mrb[14].mxu0 %vm1529_vm2, %v2172_v34  ;;  %v2538_v34 = vld [vmem:[#allocation13 + $0x10] sm:$0xff] }
 0x827   : > { %4613 = vmatpush3.msra.mxu0 %v2338_v36  ;;  %v2321_v38 = vpop.f32.mrb[8].mxu1  ;;  %4614 = vmatprep.mubr.msk.f32.mxu0 %vm5823_vm0, %v5824_v1  ;;  %v2539_v36 = vld [vmem:[#allocation13 + $0x18] sm:$0xff] }
 0x828   : > { %v2325_v31 = vmul.f32 0.35355338, %v2321_v38  ;;  %v4611_v39 = vpop.f32.mrb[9].mxu1  ;;  %4779 = vmatprep.subr.bf16.mxu0 %v5822_v0  ;;  %v4795_v38 = vpack.c.bf16 %v2539_v36, %v2538_v34 }
 0x82a   : > { %v2326_v40 = vadd.f32 %v2325_v31, %v6415_v37  ;;  %v1270_v31 = vld [vmem:[%s1259_s26] sm:$0xff] }
 0x82c   : > { %v2327_v41 = vsel %vm1529_vm2, %v2326_v40, -inf }
 0x82d   : > { %2328 = vmax.xlane.f32.xlu1 %v2327_v41 }
 0x8ba   : > { %v2329_v42 = vpop.xlane.xlu1 %2328 }
 0x8bb   : > { %v2330_v43 = vsub.f32 %v2326_v40, %v2329_v42  ;;  %v4395_v40 = vld [vmem:[#allocation8] ss:$0 sm:$0xff] }
 0x8bd   : > { %v2331_v44 = vmul.f32 1.442695, %v2330_v43 }
 0x8bf   : > { %5108 = vpow2.f32 %v2331_v44  ;;  %v4399_v44 = vld [vmem:[#allocation14] ss:$0 sm:$0xff] }
 0x8c9   : > { %v5109_v45 = vpop.eup %5108 }
 0x8ca   : > { %4615 = vmatmul.mubr.msk.f32.vlgmr.msra.gmra.mrb[16].mxu0 %vm1529_vm2, %v5109_v45  ;;  %v2333_v46 = vsel %vm1529_vm2, %v5109_v45, 0.0 }
 0x8cb   : > { %2334 = vadd.xlane.f32.xlu1 %v2333_v46  ;;  %4630 = vmatprep.mubr.msk.f32.mxu0 %vm5823_vm0, %v5824_v1 }
 0x8cc   : > { %4781 = vmatpush3.bf16.msra.mxu0 %v4780_v13 }
 0x8cd   : > { %4782 = vmatprep.subr.bf16.mxu0 %v5822_v0 }
 0x8f9   : > { %v2242_v37 = vpop.f32.mrb[14].mxu0 }
 0x8fa   : > { %v2246_v48 = vadd.f32 %v2242_v37, %v2003_v15  ;;  %v4606_v49 = vpop.f32.mrb[15].mxu0  ;;  %v2529_v15 = vld [vmem:[%s6766_s3 + $0x18] sm:$0xff] }
 0x8fb   : > { %v4783_v17 = vpack.c.bf16 %v2529_v15, %v2528_v14 }
 0x8fd   : > { %4784 = vmatpush3.bf16.msra.mxu0 %v4783_v17 }
 0x8fe   : > { %4791 = vmatprep.subr.bf16.mxu0 %v5822_v0 }
 0x958   : > { %v2335_v50 = vpop.xlane.xlu1 %2334 }
 0x959   : > { %5110 = vrcp.f32 %v2335_v50 }
 0x963   : > { %v5111_v51 = vpop.eup %5110 }
 0x99d   : > { %v2409_v52 = vpop.f32.mrb[16].mxu0 }
 0x99e   : > { %v2413_v53 = vmul.f32 %v5111_v51, %v2409_v52  ;;  %v4616_v54 = vpop.f32.mrb[17].mxu0 }
 0x9a0   : > { %4620 = vmatmul.mubr.msk.f32.vlgmr.msra.gmra.mrb[10].mxu1 %vm1529_vm2, %v2413_v53 }
 0x9a1   : > { %4641 = vmatprep.mubr.msk.f32.mxu1 %vm5823_vm0, %v5824_v1  ;;  %4787 = vmatpush3.bf16.msra.mxu1 %v4786_v7  ;;  %v2541_v7 = vld [vmem:[#allocation16] sm:$0xff] }
 0x9a2   : > { %4788 = vmatprep.subr.bf16.mxu1 %v5822_v0 }
 0xa73   : > { %v2483_v56 = vpop.f32.mrb[10].mxu1 }
 0xa74   : > { %v2487_v57 = vadd.f32 %v2483_v56, %v2246_v48  ;;  %v4621_v58 = vpop.f32.mrb[11].mxu1  ;;  %v1274_v48 = vld [vmem:[%s1263_s7] sm:$0xff] }
 0xa75   : > { %vm1275_vm4 = vcmp.eq.f32.partialorder %v1274_v48, 0.0 }
 0xa76   : > { %v2494_v59 = vadd.f32 %v4392_v55, %v2487_v57  ;;  %v6534_v50 = vsel %vm1275_vm4, -1e+09, %v5824_v1 }
 0xa78   : > { %v2495_v60 = vadd.f32 %v2494_v59, %v6362_v10  ;;  %v2533_v10 = vld [vmem:[#allocation10 + $0x10] sm:$0xff] }
 0xa79   : > { %v4789_v9 = vpack.c.bf16 %v2534_v8, %v2533_v10 }
 0xa7a   : > { %v2498_v61 = vsel %vm1303_vm1, %v2495_v60, 0.0 }
 0xa7b   : > { %2499 = vadd.xlane.f32.xlu1 %v2498_v61  ;;  %4790 = vmatpush3.bf16.msra.mxu1 %v4789_v9  ;;  %v2542_v9 = vld [vmem:[#allocation16 + $0x8] sm:$0xff] }
 0xa7c   : > { %4655 = vmatprep.subr.mxu1 %v5824_v1 }
 0xa7e   : > { %4642 = vmatmul.mubr.msk.f32.vlgmr.msra.gmra.mrb[12].mxu1 %vm1303_vm1, %v1269_v16 }
 0xa7f   : > { %4657 = vmatprep.mubr.msk.f32.mxu1 %vm5823_vm0, %v5824_v1 }
 0xb08   : > { %v2500_v62 = vpop.xlane.xlu1 %2499 }
 0xb09   : > { %v2502_v63 = vmul.f32 0.03125, %v2500_v62 }
 0xb0b   : > { %v2503_v2 = vsub.f32 %v2495_v60, %v2502_v63 }
 0xb0d   : > { %v2504_v3 = vmul.f32 %v2503_v2, %v2503_v2 }
 0xb0f   : > { %v2505_v4 = vsel %vm1303_vm1, %v2504_v3, 0.0 }
 0xb10   : > { %2506 = vadd.xlane.f32.xlu0 %v2505_v4 }
 0xb51   : > { %v2700_v26 = vpop.f32.mrb[12].mxu1 }
 0xb52   : > { %v6504_v29 = vadd.f32 %v4397_v28, %v2700_v26  ;;  %v4643_v30 = vpop.f32.mrb[13].mxu1 }
 0xb54   : > { %2947 = vrot.lane.b32.xlu1 %v6504_v29, %s5825_s12  ;;  %4656 = vmatpush3.xpose.msk.msra.mxu1 %vm1529_vm2, %v6504_v29 }
 0xb55   : > { %4660 = vmatprep.subr.mxu1 %v5824_v1 }
 0xb9d   : > { %v2507_v18 = vpop.xlane.xlu0 %2506 }
 0xb9e   : > { %v2508_v19 = vmul.f32 0.03125, %v2507_v18 }
 0xba0   : > { %v2509_v20 = vadd.f32 1e-05, %v2508_v19 }
 0xba2   : > { %5112 = vrsqrt.f32 %v2509_v20 }
 0xbac   : > { %v5113_v21 = vpop.eup %5112 }
 0xbad   : > { %v2511_v23 = vmul.f32 %v5113_v21, %v2503_v2 }
 0xbaf   : > { %v2518_v25 = vmul.f32 %v4393_v22, %v2511_v23 }
 0xbb1   : > { %v6498_v27 = vadd.f32 %v4394_v24, %v2518_v25 }
 0xbb3   : > { %4631 = vmatmul.mubr.msk.f32.vlgmr.msra.gmra.mrb[18].mxu0 %vm1303_vm1, %v6498_v27 }
 0xbb4   : > { %4652 = vmatprep.mubr.msk.f32.mxu0 %vm5823_vm0, %v5824_v1  ;;  %4793 = vmatpush3.bf16.msra.mxu0 %v4792_v35 }
 0xbb5   : > { %4794 = vmatprep.subr.bf16.mxu0 %v5822_v0 }
 0xbb8   : > { %4796 = vmatpush3.bf16.msra.mxu0 %v4795_v38 }
 0xbb9   : > { %4665 = vmatprep.subr.mxu0 %v5824_v1 }
 0xbbb   : > { %4653 = vmatmul.mubr.msk.f32.vlgmr.msra.gmra.mrb[20].mxu0 %vm1303_vm1, %v1270_v31 }
 0xbbc   : > { %4667 = vmatprep.mubr.msk.f32.mxu0 %vm5823_vm0, %v5824_v1 }
 0xbc6   : > { %v2948_v39 = vpop.permute.xlu1 %2947 }
 0xbc7   : > { %4666 = vmatpush3.xpose.msk.msra.mxu0 %vm1529_vm2, %v2948_v39 }
 0xbc8   : > { %4675 = vmatprep.subr.mxu0 %v5824_v1 }
 0xc86   : > { %v2621_v41 = vpop.f32.mrb[18].mxu0 }
 0xc87   : > { %v2622_v42 = vadd.f32 %v4395_v40, %v2621_v41  ;;  %v4632_v43 = vpop.f32.mrb[19].mxu0 }
 0xc89   : > { %2945 = vrot.lane.b32.xlu1 %v2622_v42, %s5825_s12  ;;  %4658 = vmatmul.mubr.msk.f32.vlgmr.msra.gmra.mrb[14].mxu1 %vm1529_vm2, %v2622_v42 }
 0xc8a   : > { %4662 = vmatprep.mubr.msk.f32.mxu1 %vm5823_vm0, %v5824_v1 }
 0xc8e   : > { %v2779_v45 = vpop.f32.mrb[20].mxu0 }
 0xc8f   : > { %v6524_v46 = vadd.f32 %v4399_v44, %v2779_v45  ;;  %v4654_v47 = vpop.f32.mrb[21].mxu0 }
 0xc91   : > { %4661 = vmatpush3.msra.mxu1 %v6524_v46 }
 0xc92   : > { %4670 = vmatprep.subr.mxu1 %v5824_v1 }
 0xcfb   : > { %v2946_v37 = vpop.permute.xlu1 %2945 }
 0xcfc   : > { %4668 = vmatmul.mubr.msk.f32.vlgmr.msra.gmra.mrb[22].mxu0 %vm1529_vm2, %v2946_v37 }
 0xcfd   : > { %4677 = vmatprep.mubr.msk.f32.mxu0 %vm5823_vm0, %v5824_v1  ;;  %4676 = vmatpush3.msra.mxu0 %v2542_v9 }
 0xcfe   : > { %4685 = vmatprep.subr.mxu0 %v5824_v1 }
 0xd5c   : > { %v2855_v49 = vpop.f32.mrb[14].mxu1 }
 0xd5d   : > { %v2859_v51 = vmul.f32 0.35355338, %v2855_v49  ;;  %v4659_v52 = vpop.f32.mrb[15].mxu1 }
 0xd5f   : > { %v2860_v53 = vadd.f32 %v2859_v51, %v6534_v50 }
 0xd61   : > { %v2861_v54 = vsel %vm1529_vm2, %v2860_v53, -inf }
 0xd62   : > { %2862 = vmax.xlane.f32.xlu1 %v2861_v54 }
 0xd73   : > { %3261 = vrot.lane.b32.xlu1 %v6504_v29, %s5826_s22 }
 0xd77   : > { %3259 = vrot.lane.b32.xlu1 %v2622_v42, %s5826_s22 }
 0xdcf   : > { %v3019_v55 = vpop.f32.mrb[22].mxu0 }
 0xdd0   : > { %v3023_v56 = vmul.f32 0.35355338, %v3019_v55  ;;  %v4669_v57 = vpop.f32.mrb[23].mxu0 }
 0xdd2   : > { %v3024_v58 = vadd.f32 %v3023_v56, %v6534_v50 }
 0xdd4   : > { %v3025_v59 = vsel %vm1529_vm2, %v3024_v58, -inf }
 0xdd5   : > { %3026 = vmax.xlane.f32.xlu0 %v3025_v59 }
 0xdeb   : > { %3036 = vrot.lane.b32.xlu0 %v6524_v46, %s5825_s12  ;;  %s1245_s12 = sand.u32 1, %s5760_s23  }
 0xdec   : > { %s3988_s1 = scalar_lea.sflag [#allocation4], %s1245_s12 }
 0xdef   : > { %v2863_v60 = vpop.xlane.xlu1 %2862 }
 0xdf0   : > { %v2864_v61 = vsub.f32 %v2860_v53, %v2863_v60  ;;  %v2544_v60 = vld [vmem:[#allocation16 + $0x18] sm:$0xff] }
 0xdf2   : > { %v2865_v62 = vmul.f32 1.442695, %v2864_v61 }
 0xdf3   : > { %v3262_v11 = vpop.permute.xlu1 %3261 }
 0xdf4   : > { %5114 = vpow2.f32 %v2865_v62 }
 0xdf7   : > { %v3260_v12 = vpop.permute.xlu1 %3259 }
 0xdfe   : > { %v5115_v63 = vpop.eup %5114 }
 0xdff   : > { %4663 = vmatmul.mubr.msk.f32.vlgmr.msra.gmra.mrb[16].mxu1 %vm1529_vm2, %v5115_v63  ;;  %v2867_v2 = vsel %vm1529_vm2, %v5115_v63, 0.0 }
 0xe00   : > { %2868 = vadd.xlane.f32.xlu1 %v2867_v2  ;;  %4672 = vmatprep.mubr.msk.f32.mxu1 %vm5823_vm0, %v5824_v1 }
 0xe11   : > { %3500 = vrot.lane.b32.xlu1 %v2622_v42, %s6770_s10 }
 0xe62   : > { %v3027_v3 = vpop.xlane.xlu0 %3026 }
 0xe63   : > { %v3028_v4 = vsub.f32 %v3024_v58, %v3027_v3 }
 0xe65   : > { %v3029_v5 = vmul.f32 1.442695, %v3028_v4 }
 0xe66   : > { %v3037_v6 = vpop.permute.xlu0 %3036 }
 0xe67   : > { %5116 = vpow2.f32 %v3029_v5  ;;  %4671 = vmatpush3.msra.mxu1 %v3037_v6  ;;  %v4417_v6 = vld [vmem:[#allocation17] ss:$0 sm:$0xff] }
 0xe68   : > { %4680 = vmatprep.subr.mxu1 %v5824_v1 }
 0xe71   : > { %v5117_v10 = vpop.eup %5116 }
 0xe72   : > { %4673 = vmatmul.mubr.msk.f32.vlgmr.msra.gmra.mrb[18].mxu1 %vm1529_vm2, %v5117_v10  ;;  %v3031_v8 = vsel %vm1529_vm2, %v5117_v10, 0.0 }
 0xe73   : > { %3032 = vadd.xlane.f32.xlu0 %v3031_v8  ;;  %4681 = vmatpush3.msra.mxu1 %v2541_v7 }
 0xe74   : > { %4682 = vmatprep.mubr.msk.f32.mxu1 %vm5823_vm0, %v5824_v1  ;;  %4690 = vmatprep.subr.mxu1 %v5824_v1 }
 0xe89   : > { %3349 = vrot.lane.b32.xlu0 %v6524_v46, %s5826_s22  ;;  %s4364_s22 = sshll.u32 %s1245_s12, 3 }
 0xe8a   : > { %s1247_s26 = scalar_lea.vmem [#allocation32], %s4364_s22  ;;  %s5670_s22 = sshll.u32 %s5828_s28, 4  ;;  %s5671_s22 = int_to_ptr.vmem [resolvable:$false] %s5670_s22 }
 0xe8b   : > { %s4001_s7 = sshll.u32 %s1247_s26, 4  ;;  %s5672_s3 = scalar_lea.vmem %s5671_s22, 256  ;;  %s6636_s7 = int_to_ptr.vmem [resolvable:$true] %s4001_s7 }
 0xe8c   : > { %s5666_s2 = scalar_lea.vmem %s6636_s7, 128  ;;  %p5673_p8 = scmp.lt.s32.totalorder %s6636_s7, %s5671_s22 }
 0xe8d   : > { %v2869_v13 = vpop.xlane.xlu1 %2868  ;;  %p5667_p6 = scmp.ne.s32.totalorder %s6636_s7, %s5666_s2  ;;  %p5674_p11 = scmp.lt.s32.totalorder %s5672_s3, %s5666_s2 }
 0xe8e   : > { %5118 = vrcp.f32 %v2869_v13 }
 0xe8f   : > { %p5668_p10 = pnand %p5667_p6, %p6771_p9  ;;  %p5675_p13 = por %p5674_p11, %p5673_p8 }
 0xe91   : > { %v3501_v43 = vpop.permute.xlu1 %3500  ;;  %p5669_p7 = pneg %p5668_p10 }
 0xe93   : > { %p5676_p1 = pnand %p5675_p13, %p5669_p7 }
 0xe98   : > { %v5119_v14 = vpop.eup %5118 }
 0xed2   : > { %v2940_v15 = vpop.f32.mrb[16].mxu1 }
 0xed3   : > { %v2944_v16 = vmul.f32 %v5119_v14, %v2940_v15  ;;  %v4664_v17 = vpop.f32.mrb[17].mxu1 }
 0xed4   : > { %v3778_v17 = vld [vmem:[#allocation28] sm:$0xff] }
 0xed5   : > { %4683 = vmatmul.mubr.msk.f32.vlgmr.msra.gmra.mrb[20].mxu1 %vm1529_vm2, %v2944_v16 }
 0xed6   : > { %4692 = vmatprep.mubr.msk.f32.mxu1 %vm5823_vm0, %v5824_v1 }
 0xf00   : > { %v3033_v18 = vpop.xlane.xlu0 %3032 }
 0xf01   : > { %5120 = vrcp.f32 %v3033_v18  ;;  %v3779_v18 = vld [vmem:[#allocation28 + $0x8] sm:$0xff] }
 0xf04   : > { %v3350_v19 = vpop.permute.xlu0 %3349 }
 0xf05   : > { %4691 = vmatpush3.msra.mxu1 %v3350_v19  ;;  %v4798_v19 = vpack.c.bf16 %v3779_v18, %v3778_v17 }
 0xf06   : > { %4700 = vmatprep.subr.mxu1 %v5824_v1 }
 0xf0b   : > { %v5121_v20 = vpop.eup %5120 }
 0xf45   : > { %v3108_v21 = vpop.f32.mrb[18].mxu1 }
 0xf46   : > { %v3112_v22 = vmul.f32 %v5121_v20, %v3108_v21  ;;  %v4674_v23 = vpop.f32.mrb[19].mxu1  ;;  %v3781_v20 = vld [vmem:[#allocation28 + $0x18] sm:$0xff] }
 0xf47   : > { %v3864_v23 = vld [vmem:[%s5982_s14 + $0x8] sm:$0xff] }
 0xf48   : > { %4678 = vmatmul.mubr.msk.f32.vlgmr.msra.gmra.mrb[24].mxu0 %vm1529_vm2, %v3112_v22  ;;  %v3863_v22 = vld [vmem:[%s5982_s14] sm:$0xff] }
 0xf49   : > { %4686 = vmatpush3.xpose.msk.msra.mxu0 %vm1529_vm2, %v3262_v11  ;;  %4687 = vmatprep.mubr.msk.f32.mxu0 %vm5823_vm0, %v5824_v1 }
 0xf4a   : > { %4695 = vmatprep.subr.mxu0 %v5824_v1 }
 0xf4c   : > { %4688 = vmatmul.mubr.msk.f32.vlgmr.msra.gmra.mrb[26].mxu0 %vm1529_vm2, %v3260_v12 }
 0xf4d   : > { %4697 = vmatprep.mubr.msk.f32.mxu0 %vm5823_vm0, %v5824_v1 }
 0xfa8   : > { %v3255_v24 = vpop.f32.mrb[20].mxu1 }
 0xfa9   : > { %v4684_v25 = vpop.f32.mrb[21].mxu1 }
 0xfaa   : > { %v4804_v25 = vpack.c.bf16 %v3864_v23, %v3863_v22 }
0x101b   : > { %v3182_v28 = vpop.f32.mrb[24].mxu0 }
0x101c   : > { %v3256_v26 = vadd.f32 %v3255_v24, %v3182_v28  ;;  %v4679_v30 = vpop.f32.mrb[25].mxu0  ;;  %v3865_v24 = vld [vmem:[%s5982_s14 + $0x10] sm:$0xff]  ;;  %v3866_v28 = vld [vmem:[%s5982_s14 + $0x18] sm:$0xff] }
0x101d   : > { %v3867_v30 = vld [vmem:[%s5982_s14 + $0x20] sm:$0xff] }
0x101f   : > { %v3333_v32 = vpop.f32.mrb[26].mxu0 }
0x1020   : > { %v3337_v33 = vmul.f32 0.35355338, %v3333_v32  ;;  %v4689_v34 = vpop.f32.mrb[27].mxu0  ;;  %v3868_v32 = vld [vmem:[%s5982_s14 + $0x28] sm:$0xff] }
0x1021   : > { %v3869_v34 = vld [vmem:[%s5982_s14 + $0x30] sm:$0xff] }
0x1022   : > { %v3338_v35 = vadd.f32 %v3337_v33, %v6534_v50  ;;  %v4810_v33 = vpack.c.bf16 %v3868_v32, %v3867_v30 }
0x1024   : > { %v3339_v36 = vsel %vm1529_vm2, %v3338_v35, -inf }
0x1025   : > { %3340 = vmax.xlane.f32.xlu0 %v3339_v36 }
0x103b   : > { %3502 = vrot.lane.b32.xlu0 %v6504_v29, %s6770_s10  ;;  %v2543_v29 = vld [vmem:[#allocation16 + $0x10] sm:$0xff] }
0x103c   : > { %4696 = vmatpush3.msra.mxu0 %v2543_v29  ;;  %v3876_v29 = vld [vmem:[%s5982_s14 + $0x68] sm:$0xff] }
0x103d   : > { %4705 = vmatprep.subr.mxu0 %v5824_v1 }
0x10b2   : > { %v3341_v38 = vpop.xlane.xlu0 %3340 }
0x10b3   : > { %v3342_v31 = vsub.f32 %v3338_v35, %v3341_v38  ;;  %v3870_v35 = vld [vmem:[%s5982_s14 + $0x38] sm:$0xff]  ;;  %v3871_v38 = vld [vmem:[%s5982_s14 + $0x40] sm:$0xff] }
0x10b4   : > { %v4813_v36 = vpack.c.bf16 %v3870_v35, %v3869_v34 }
0x10b5   : > { %v3343_v39 = vmul.f32 1.442695, %v3342_v31  ;;  %v3872_v31 = vld [vmem:[%s5982_s14 + $0x48] sm:$0xff] }
0x10b6   : > { %v3503_v41 = vpop.permute.xlu0 %3502 }
0x10b7   : > { %5122 = vpow2.f32 %v3343_v39  ;;  %v4816_v39 = vpack.c.bf16 %v3872_v31, %v3871_v38 }
0x10c1   : > { %v5123_v40 = vpop.eup %5122 }
0x10c2   : > { %4693 = vmatmul.mubr.msk.f32.vlgmr.msra.gmra.mrb[22].mxu1 %vm1529_vm2, %v5123_v40  ;;  %v3345_v42 = vsel %vm1529_vm2, %v5123_v40, 0.0  ;;  %v3873_v40 = vld [vmem:[%s5982_s14 + $0x50] sm:$0xff] }
0x10c3   : > { %4701 = vmatpush3.xpose.msk.msra.mxu1 %vm1529_vm2, %v3503_v41  ;;  %3346 = vadd.xlane.f32.xlu0 %v3345_v42  ;;  %v3874_v41 = vld [vmem:[%s5982_s14 + $0x58] sm:$0xff] }
0x10c4   : > { %4702 = vmatprep.mubr.msk.f32.mxu1 %vm5823_vm0, %v5824_v1  ;;  %4710 = vmatprep.subr.mxu1 %v5824_v1  ;;  %v4819_v42 = vpack.c.bf16 %v3874_v41, %v3873_v40 }
0x10c6   : > { %4703 = vmatmul.mubr.msk.f32.vlgmr.msra.gmra.mrb[24].mxu1 %vm1529_vm2, %v3501_v43  ;;  %v3875_v43 = vld [vmem:[%s5982_s14 + $0x60] sm:$0xff] }
0x10c7   : > { %4712 = vmatprep.mubr.msk.f32.mxu1 %vm5823_vm0, %v5824_v1  ;;  %4711 = vmatpush3.msra.mxu1 %v2544_v60 }
0x10c8   : > { %4803 = vmatprep.subr.bf16.mxu1 %v5822_v0 }
0x10d9   : > { %3590 = vrot.lane.b32.xlu0 %v6524_v46, %s6770_s10  ;;  %s6634_s10 = scalar_lea.hbm %s5992_s5, %s4426_s11 }
0x1150   : > { %v3347_v44 = vpop.xlane.xlu0 %3346 }
0x1151   : > { %5124 = vrcp.f32 %v3347_v44  ;;  %v4822_v44 = vpack.c.bf16 %v3876_v29, %v3875_v43 }
0x1154   : > { %v3591_v49 = vpop.permute.xlu0 %3590 }
0x115b   : > { %v5125_v45 = vpop.eup %5124 }
0x1195   : > { %v3421_v47 = vpop.f32.mrb[22].mxu1 }
0x1196   : > { %v3425_v37 = vmul.f32 %v5125_v45, %v3421_v47  ;;  %v4694_v48 = vpop.f32.mrb[23].mxu1 }
0x1198   : > { %4698 = vmatmul.mubr.msk.f32.vlgmr.msra.gmra.mrb[28].mxu0 %vm1529_vm2, %v3425_v37 }
0x1199   : > { %4706 = vmatpush3.msra.mxu0 %v3591_v49  ;;  %v3574_v51 = vpop.f32.mrb[24].mxu1  ;;  %4707 = vmatprep.mubr.msk.f32.mxu0 %vm5823_vm0, %v5824_v1  ;;  %v4418_v49 = vld [vmem:[#allocation22] ss:$0 sm:$0xff] }
0x119a   : > { %v3578_v52 = vmul.f32 0.35355338, %v3574_v51  ;;  %v4704_v46 = vpop.f32.mrb[25].mxu1  ;;  %4797 = vmatprep.subr.bf16.mxu0 %v5822_v0 }
0x119c   : > { %v3579_v53 = vadd.f32 %v3578_v52, %v6534_v50  ;;  %v4419_v52 = vld [vmem:[#allocation23] ss:$0 sm:$0xff] }
0x119e   : > { %v3580_v54 = vsel %vm1529_vm2, %v3579_v53, -inf }
0x119f   : > { %3581 = vmax.xlane.f32.xlu1 %v3580_v54  ;;  %v3877_v54 = vld [vmem:[%s5982_s14 + $0x70] sm:$0xff] }
0x122c   : > { %v3582_v55 = vpop.xlane.xlu1 %3581 }
0x122d   : > { %v3583_v56 = vsub.f32 %v3579_v53, %v3582_v55  ;;  %v3878_v55 = vld [vmem:[%s5982_s14 + $0x78] sm:$0xff] }
0x122f   : > { %v3584_v57 = vmul.f32 1.442695, %v3583_v56  ;;  %v4825_v56 = vpack.c.bf16 %v3878_v55, %v3877_v54 }
0x1231   : > { %5126 = vpow2.f32 %v3584_v57  ;;  %v4420_v57 = vld [vmem:[#allocation29] ss:$0 sm:$0xff] }
0x123b   : > { %v5127_v58 = vpop.eup %5126 }
0x123c   : > { %4708 = vmatmul.mubr.msk.f32.vlgmr.msra.gmra.mrb[30].mxu0 %vm1529_vm2, %v5127_v58  ;;  %v3586_v59 = vsel %vm1529_vm2, %v5127_v58, 0.0 }
0x123d   : > { %3587 = vadd.xlane.f32.xlu1 %v3586_v59  ;;  %4723 = vmatprep.mubr.msk.f32.mxu0 %vm5823_vm0, %v5824_v1 }
0x123e   : > { %4799 = vmatpush3.bf16.msra.mxu0 %v4798_v19 }
0x123f   : > { %4800 = vmatprep.subr.bf16.mxu0 %v5822_v0 }
0x126b   : > { %v3495_v50 = vpop.f32.mrb[28].mxu0 }
0x126c   : > { %v3499_v61 = vadd.f32 %v3495_v50, %v3256_v26  ;;  %v4699_v62 = vpop.f32.mrb[29].mxu0  ;;  %v4807_v26 = vpack.c.bf16 %v3866_v28, %v3865_v24  ;;  %v4422_v50 = vld [vmem:[#allocation31] ss:$0 sm:$0xff] }
0x12ca   : > { %v3588_v63 = vpop.xlane.xlu1 %3587 }
0x12cb   : > { %5128 = vrcp.f32 %v3588_v63 }
0x12d5   : > { %v5129_v2 = vpop.eup %5128 }
0x130f   : > { %v3662_v3 = vpop.f32.mrb[30].mxu0 }
0x1310   : > { %v3666_v4 = vmul.f32 %v5129_v2, %v3662_v3  ;;  %v4709_v5 = vpop.f32.mrb[31].mxu0 }
0x1312   : > { %4713 = vmatmul.mubr.msk.f32.vlgmr.msra.gmra.mrb[26].mxu1 %vm1529_vm2, %v3666_v4 }
0x1313   : > { %4758 = vmatprep.mubr.msk.f32.mxu1 %vm5823_vm0, %v5824_v1  ;;  %4805 = vmatpush3.bf16.msra.mxu1 %v4804_v25 }
0x1314   : > { %4806 = vmatprep.subr.bf16.mxu1 %v5822_v0 }
0x1317   : > { %4808 = vmatpush3.bf16.msra.mxu1 %v4807_v26 }
0x1318   : > { %4809 = vmatprep.subr.bf16.mxu1 %v5822_v0 }
0x131b   : > { %4811 = vmatpush3.bf16.msra.mxu1 %v4810_v33 }
0x131c   : > { %4812 = vmatprep.subr.bf16.mxu1 %v5822_v0 }
0x131f   : > { %4814 = vmatpush3.bf16.msra.mxu1 %v4813_v36 }
0x1320   : > { %4815 = vmatprep.subr.bf16.mxu1 %v5822_v0 }
0x1323   : > { %4817 = vmatpush3.bf16.msra.mxu1 %v4816_v39 }
0x1324   : > { %4818 = vmatprep.subr.bf16.mxu1 %v5822_v0 }
0x1327   : > { %4820 = vmatpush3.bf16.msra.mxu1 %v4819_v42 }
0x1328   : > { %4821 = vmatprep.subr.bf16.mxu1 %v5822_v0 }
0x132b   : > { %4823 = vmatpush3.bf16.msra.mxu1 %v4822_v44 }
0x132c   : > { %4824 = vmatprep.subr.bf16.mxu1 %v5822_v0 }
0x132f   : > { %4826 = vmatpush3.bf16.msra.mxu1 %v4825_v56 }
0x13e5   : > { %v3736_v7 = vpop.f32.mrb[26].mxu1 }
0x13e6   : > { %v3740_v10 = vadd.f32 %v3736_v7, %v3499_v61  ;;  %v4714_v8 = vpop.f32.mrb[27].mxu1 }
0x13e8   : > { %v3747_v9 = vadd.f32 %v4417_v6, %v3740_v10 }
0x13ea   : > { %v3748_v11 = vadd.f32 %v3747_v9, %v6498_v27  ;;  %v3780_v27 = vld [vmem:[#allocation28 + $0x10] sm:$0xff] }
0x13eb   : > { %v4801_v21 = vpack.c.bf16 %v3781_v20, %v3780_v27 }
0x13ec   : > { %v3751_v12 = vsel %vm1303_vm1, %v3748_v11, 0.0 }
0x13ed   : > { %3752 = vadd.xlane.f32.xlu0 %v3751_v12  ;;  %4802 = vmatpush3.bf16.msra.mxu0 %v4801_v21 }
0x147a   : > { %v3753_v13 = vpop.xlane.xlu0 %3752 }
0x147b   : > { %v3754_v14 = vmul.f32 0.03125, %v3753_v13  ;;  %v4423_v13 = vld [vmem:[#allocation25] ss:$0 sm:$0xff] }
0x147d   : > { %v3755_v15 = vsub.f32 %v3748_v11, %v3754_v14 }
0x147f   : > { %v3756_v16 = vmul.f32 %v3755_v15, %v3755_v15 }
0x1481   : > { %v3757_v1 = vsel %vm1303_vm1, %v3756_v16, 0.0 }
0x1482   : > { %3758 = vadd.xlane.f32.xlu1 %v3757_v1 }
0x150f   : > { %v3759_v45 = vpop.xlane.xlu1 %3758 }
0x1510   : > { %v3760_v47 = vmul.f32 0.03125, %v3759_v45 }
0x1512   : > { %v3761_v37 = vadd.f32 1e-05, %v3760_v47 }
0x1514   : > { %5130 = vrsqrt.f32 %v3761_v37 }
0x151e   : > { %v5131_v48 = vpop.eup %5130 }
0x151f   : > { %v3763_v51 = vmul.f32 %v5131_v48, %v3755_v15  ;;  %v4424_v15 = vld [vmem:[#allocation26] ss:$0 sm:$0xff] }
0x1521   : > { %v3770_v46 = vmul.f32 %v4418_v49, %v3763_v51 }
0x1523   : > { %v3777_v53 = vadd.f32 %v4419_v52, %v3770_v46 }
0x1525   : > { %4724 = vmatmul.mubr.msk.f32.vlgmr.msra.gmra.mrb[32].mxu0 %vm1303_vm1, %v3777_v53 }
0x15f8   : > { %v3858_v58 = vpop.f32.mrb[32].mxu0 }
0x15f9   : > { %v3859_v59 = vadd.f32 %v4420_v57, %v3858_v58  ;;  %v4725_v0 = vpop.f32.mrb[33].mxu0 }
0x15fb   : > { %v3862_v60 = vmax.f32 %v3859_v59, 0.0 }
0x15fd   : > { %4759 = vmatmul.mubr.f32.vlgmr.msra.gmra.mrb[28].mxu1 %v3862_v60 }
0x16d0   : > { %v3952_v61 = vpop.f32.mrb[28].mxu1 }
0x16d1   : > { %v3953_v62 = vadd.f32 %v4422_v50, %v3952_v61  ;;  %v4760_v63 = vpop.f32.mrb[29].mxu1 }
0x16d3   : > { %v3956_v2 = vadd.f32 %v3953_v62, %v3777_v53 }
0x16d5   : > { %v3959_v3 = vsel %vm1303_vm1, %v3956_v2, 0.0 }
0x16d6   : > { %3960 = vadd.xlane.f32.xlu1 %v3959_v3 }
0x1763   : > { %v3961_v4 = vpop.xlane.xlu1 %3960 }
0x1764   : > { %v3962_v5 = vmul.f32 0.03125, %v3961_v4 }
0x1766   : > { %v3963_v6 = vsub.f32 %v3956_v2, %v3962_v5 }
0x1768   : > { %v3964_v7 = vmul.f32 %v3963_v6, %v3963_v6 }
0x176a   : > { %v3965_v10 = vsel %vm1303_vm1, %v3964_v7, 0.0 }
0x176b   : > { %3966 = vadd.xlane.f32.xlu1 %v3965_v10 }
0x17f8   : > { %v3967_v8 = vpop.xlane.xlu1 %3966 }
0x17f9   : > { %v3968_v9 = vmul.f32 0.03125, %v3967_v8 }
0x17fb   : > { %v3969_v11 = vadd.f32 1e-05, %v3968_v9 }
0x17fd   : > { %5132 = vrsqrt.f32 %v3969_v11 }
0x1807   : > { %v5133_v12 = vpop.eup %5132 }
0x1808   : > { %v3971_v14 = vmul.f32 %v5133_v12, %v3963_v6 }
0x180a   : > { %v3978_v16 = vmul.f32 %v4423_v13, %v3971_v14 }
0x180c   : > { %v3985_v1 = vadd.f32 %v4424_v15, %v3978_v16 }
0x180e   : > { %3986 = vst.msk [vmem:[%s1247_s26] sm:$0xff] %vm1303_vm1, %v3985_v1 }
0x180f   : > { %5679 = shalt.err (!%p5676_p1)
}
0x1810   : > { %s5680_s12 = scalar_lea.hbm %s6634_s10, 128  ;;  %s5684_s11 = scalar_lea.hbm %s5992_s5, 256 }
0x1811   : > { %p5681_p2 = scmp.ne.s32.totalorder %s6634_s10, %s5680_s12  ;;  %p5685_p4 = scmp.lt.u32.totalorder %s6634_s10, %s5992_s5 }
0x1812   : > { %p5686_p12 = scmp.lt.u32.totalorder %s5684_s11, %s5680_s12  ;;  %p5688_p6 = scmp.lt.u32.totalorder %s5680_s12, %s6634_s10 }
0x1813   : > { %p5682_p0 = pnand %p5681_p2, %p6771_p9 }
0x1814   : > { %p5687_p5 = por %p5686_p12, %p5685_p4 }
0x1815   : > { %p5683_p3 = pneg %p5682_p0 }
0x1816   : > { %p5689_p10 = por %p5688_p6, %p5687_p5 }
0x1818   : > { %p5690_p7 = pnand %p5689_p10, %p5683_p3 }
0x181a   : > { %5693 = shalt.err (!%p5690_p7)
}
0x181b   : > { %4903 = dma.vmem_to_hbm [thread:$0]  (%p6771_p9), %s6636_s7, 128, %s6634_s10, %s3988_s1  }
0x181c PF: > { %s6772_s2 = sld [smem:[#allocation62_spill]]  ;;  %s6773_s3 = sld [smem:[#allocation66_spill]] }
0x181d   : > { %p5005_p8 = scmp.ge.s32.totalorder %s5768_s0, 2 }
0x1822   : > { %s4013_s26 = sand.u32 1, %s6772_s2   ;;  %p6774_p11 = scmp.ne.s32.totalorder %s6773_s3, 0 }
0x1823   : > { %s4014_s28 = scalar_lea.sflag [#allocation4], %s4013_s26 }
0x1824   : > { %p4964_p13 = pnand %p5005_p8, %p6774_p11 }
0x1826   : > { %5751 = dma.done.wait (!%p4964_p13), %s4014_s28, 128  }
0x1827   : > { %5753 = vsyncadd (!%p4964_p13), %s4014_s28, 4294967168  ;;  %s6775_s0 = sld [smem:[#allocation64_spill]]  ;;  %s6776_s12 = sld [smem:[#allocation63_spill]] }
0x1828   : > { %s6777_s26 = sld [smem:[#allocation65_spill]]  ;;  %s6778_s22 = smov %s5760_s23 }
0x182d   : > { %p83_p1 = scmp.ge.s32.totalorder %s6775_s0, 4   ;;  %s6779_s23 = smov %s6776_s12 }
0x182f   :  { %85 = sbr.rel (!%p83_p1) target bundleno = 64 (0x40), region = 299 }
0x1836   :  { %4019 = vsyncpa [#allocation3], 1 }
0x1837   :  { %4021 = vsyncpa [#allocation3 + $0x1], 1 }
0x1838   :  { %4022 = vsyncpa [#allocation6], 1 }
0x1839   :  { %4023 = vsyncpa [#allocation9], 1 }
0x183a   :  { %4024 = vsyncpa [#allocation12], 1 }
0x183b   :  { %4025 = vsyncpa [#allocation15], 1 }
0x183c   :  { %4026 = vsyncpa [#allocation18], 1 }
0x183d   :  { %4027 = vsyncpa [#allocation21], 1 }
0x183e   :  { %4028 = vsyncpa [#allocation24], 1 }
0x183f   :  { %4029 = vsyncpa [#allocation27], 1 }
0x1840   :  { %4030 = vsyncpa [#allocation30], 1 }
0x1841   :  { %4031 = vsyncpa [#allocation4], 1 }
0x1842   :  { %4033 = vsyncpa [#allocation4 + $0x1], 1 }

</bundles_post_ra>
